<compile_context>
chip_gen: v7x
topology: tpu7x:2x2x1
jax: 0.10.0
libtpu: 0.0.40
codegen_flags: <defaults>
</compile_context>

<pallas_src>
import functools
import math

import jax
import jax.numpy as jnp
from jax import lax
from jax.experimental import pallas as pl
from jax.experimental.pallas import tpu as pltpu


def _lwa_kernel(rgb_ref, dep_ref, wr_ref, wd_ref, w1t_ref, b1_ref, w2_ref, b2_ref,
                o_ref, *, inv_sqrt_c, inv_hw, blk_m):
    # rgb_ref/dep_ref: (1, C, HW)   channels-major, HW lane-dense
    # wr_ref/wd_ref:   (C, C)       1x1 conv weights (out_ch, in_ch)
    # w1t_ref:         (C, 24)      mlp layer-1 weight, BN-folded, transposed
    # b1_ref:          (1, 24)      mlp layer-1 folded BN bias
    # w2_ref:          (Cout, 24)   mlp layer-2 weight, BN-folded
    # b2_ref:          (Cout, 1)    mlp layer-2 folded BN bias
    # o_ref:           (1, Cout, 1)
    x_r = rgb_ref[0]                                     # (C, HW)
    x_d = dep_ref[0]                                     # (C, HW)
    hw = x_r.shape[-1]

    # 1x1 convolutions (bias=False): proj = W @ x.
    p_r = jnp.dot(wr_ref[...], x_r, preferred_element_type=jnp.float32)   # (C, HW)
    p_d = jnp.dot(wd_ref[...], x_d, preferred_element_type=jnp.float32)   # (C, HW)

    # Scale the (C, HW) projection (8 vregs) instead of the (HW, HW) energy.
    p_r_s = p_r * inv_sqrt_c

    # colw[n] = sum_m attention1[n, m] where attention1 = softmax(energy, dim=1).
    # energy^T[m, n] = sum_c p_d[c, m] * p_r_s[c, n]; softmax runs along the lane
    # axis of each row m of energy^T, so row-blocks are independent (no rescale).
    colw = jnp.zeros((1, hw), jnp.float32)
    num_blk = hw // blk_m
    for ib in range(num_blk):
        pd_blk = p_d[:, ib * blk_m:(ib + 1) * blk_m]                       # (C, blk_m)
        et = lax.dot_general(pd_blk, p_r_s, (((0,), (0,)), ((), ())),
                             preferred_element_type=jnp.float32)           # (blk_m, HW)
        mx = jnp.max(et, axis=-1, keepdims=True)
        eb = jnp.exp(et - mx)
        rb = 1.0 / jnp.sum(eb, axis=-1, keepdims=True)                     # (blk_m, 1)
        colw = colw + jnp.sum(eb * rb, axis=0, keepdims=True)              # (1, HW)

    # GAP reorder: mean over spatial of ((p_r+p_d) @ attention1 + x_r + x_d)
    #   == ((p_r+p_d) · colw + rowsum(x_r + x_d)) / HW
    p_sum = p_r + p_d
    gap_att = jnp.sum(p_sum * colw, axis=-1, keepdims=True)                # (C, 1)
    res_sum = jnp.sum(x_r + x_d, axis=-1, keepdims=True)                   # (C, 1)
    gap = (gap_att + res_sum) * inv_hw                                     # (C, 1)

    # MLP: ConvBNReLU(C->24) then ConvBNSig(24->Cout), BN folded into weights.
    h = jnp.maximum(
        jnp.sum(w1t_ref[...] * gap, axis=0, keepdims=True) + b1_ref[...],  # (1, 24)
        0.0)
    z = jnp.sum(w2_ref[...] * h, axis=1, keepdims=True) + b2_ref[...]      # (Cout, 1)
    gate = 1.0 / (1.0 + jnp.exp(-z))
    o_ref[0] = gate.astype(o_ref.dtype)


def lwa_forward(rgb, dep, w_rgb, w_dept,
                mlp1_w, mlp1_gamma, mlp1_beta, mlp1_mean, mlp1_var,
                mlp2_w, mlp2_gamma, mlp2_beta, mlp2_mean, mlp2_var,
                eps=1e-5):
    """Forward pass of lwa (PyTorch reference semantics, eval-mode BN)."""
    B, C, H, W = rgb.shape
    HW = H * W
    hidden = mlp1_w.shape[0]
    out_ch = mlp2_w.shape[0]

    # Only free reshapes on the way in (no layout transposes / extra HBM trips).
    rgb_flat = rgb.reshape(B, C, HW).astype(jnp.float32)
    dep_flat = dep.reshape(B, C, HW).astype(jnp.float32)
    wr = w_rgb.reshape(C, C).astype(jnp.float32)
    wd = w_dept.reshape(C, C).astype(jnp.float32)

    # Fold BatchNorm (running stats) into the 1x1 MLP conv weights (exact).
    s1 = mlp1_gamma / jnp.sqrt(mlp1_var + eps)
    w1t = (mlp1_w.reshape(hidden, C) * s1[:, None]).T.astype(jnp.float32)    # (C, hidden)
    b1 = (mlp1_beta - mlp1_mean * s1).reshape(1, hidden).astype(jnp.float32)
    s2 = mlp2_gamma / jnp.sqrt(mlp2_var + eps)
    w2 = (mlp2_w.reshape(out_ch, hidden) * s2[:, None]).astype(jnp.float32)  # (out_ch, hidden)
    b2 = (mlp2_beta - mlp2_mean * s2).reshape(out_ch, 1).astype(jnp.float32)

    blk_m = 128 if HW % 128 == 0 else HW   # row-block size of the streaming softmax

    kernel = functools.partial(_lwa_kernel,
                               inv_sqrt_c=1.0 / math.sqrt(C),
                               inv_hw=1.0 / HW,
                               blk_m=blk_m)

    gate = pl.pallas_call(
        kernel,
        out_shape=jax.ShapeDtypeStruct((B, out_ch, 1), jnp.float32),
        grid_spec=pltpu.PrefetchScalarGridSpec(
            num_scalar_prefetch=0,
            grid=(B,),
            in_specs=[
                pl.BlockSpec((1, C, HW), lambda b: (b, 0, 0)),
                pl.BlockSpec((1, C, HW), lambda b: (b, 0, 0)),
                pl.BlockSpec((C, C), lambda b: (0, 0)),
                pl.BlockSpec((C, C), lambda b: (0, 0)),
                pl.BlockSpec((C, hidden), lambda b: (0, 0)),
                pl.BlockSpec((1, hidden), lambda b: (0, 0)),
                pl.BlockSpec((out_ch, hidden), lambda b: (0, 0)),
                pl.BlockSpec((out_ch, 1), lambda b: (0, 0)),
            ],
            out_specs=pl.BlockSpec((1, out_ch, 1), lambda b: (b, 0, 0)),
        ),
        compiler_params=pltpu.CompilerParams(
            dimension_semantics=("parallel",)),
    )(rgb_flat, dep_flat, wr, wd, w1t, b1, w2, b2)

    return gate.reshape(B, out_ch, 1, 1)


def _reference(rgb, dep, w_rgb, w_dept,
               mlp1_w, mlp1_gamma, mlp1_beta, mlp1_mean, mlp1_var,
               mlp2_w, mlp2_gamma, mlp2_beta, mlp2_mean, mlp2_var,
               eps=1e-5):
    """Pure-JAX mirror of the PyTorch lwa.forward (BN in eval mode)."""
    B, C, H, W = rgb.shape
    HW = H * W
    rgbd = rgb + dep
    wr = w_rgb.reshape(C, C)
    wd = w_dept.reshape(C, C)
    proj_rgb = jnp.einsum('oc,bcp->bop', wr, rgb.reshape(B, C, HW))        # (B, C, HW)
    proj_dep = jnp.einsum('oc,bcp->bop', wd, dep.reshape(B, C, HW))        # (B, C, HW)
    energy = jnp.einsum('bcn,bcm->bnm', proj_rgb, proj_dep) / math.sqrt(C)  # (B, HW, HW)
    attention1 = jax.nn.softmax(energy, axis=1)
    att_r = jnp.einsum('bcn,bnm->bcm', proj_rgb, attention1)
    att_b = jnp.einsum('bcn,bnm->bcm', proj_dep, attention1)
    output = (att_r + att_b).reshape(B, C, H, W) + rgbd
    gap = jnp.mean(output, axis=(2, 3), keepdims=True)                     # (B, C, 1, 1)

    def conv_bn(x, w, gamma, beta, mean, var):
        co = w.shape[0]
        y = jnp.einsum('oc,bcij->boij', w.reshape(co, -1), x)
        s = gamma / jnp.sqrt(var + eps)
        return y * s[None, :, None, None] + (beta - mean * s)[None, :, None, None]

    h = jnp.maximum(conv_bn(gap, mlp1_w, mlp1_gamma, mlp1_beta, mlp1_mean, mlp1_var), 0.0)
    return jax.nn.sigmoid(conv_bn(h, mlp2_w, mlp2_gamma, mlp2_beta, mlp2_mean, mlp2_var))


if __name__ == "__main__":
    key = jax.random.PRNGKey(0)
    ks = jax.random.split(key, 16)

    B, C, H, W = 2, 32, 16, 16       # channel=32, spatial 16x16 -> HW=256 (lane-dense)
    hidden, outsize = 24, 16         # mlp hidden is fixed to 24 by the module

    rgb = jax.random.normal(ks[0], (B, C, H, W), dtype=jnp.float32)
    dep = jax.random.normal(ks[1], (B, C, H, W), dtype=jnp.float32)

    w_rgb = jax.random.normal(ks[2], (C, C, 1, 1), dtype=jnp.float32) / math.sqrt(C)
    w_dept = jax.random.normal(ks[3], (C, C, 1, 1), dtype=jnp.float32) / math.sqrt(C)

    mlp1_w = jax.random.normal(ks[4], (hidden, C, 1, 1), dtype=jnp.float32) * 0.2
    mlp1_gamma = 1.0 + 0.1 * jax.random.normal(ks[5], (hidden,), dtype=jnp.float32)
    mlp1_beta = 0.1 * jax.random.normal(ks[6], (hidden,), dtype=jnp.float32)
    mlp1_mean = 0.1 * jax.random.normal(ks[7], (hidden,), dtype=jnp.float32)
    mlp1_var = jnp.abs(1.0 + 0.1 * jax.random.normal(ks[8], (hidden,), dtype=jnp.float32))

    mlp2_w = jax.random.normal(ks[9], (outsize, hidden, 1, 1), dtype=jnp.float32) * 0.2
    mlp2_gamma = 1.0 + 0.1 * jax.random.normal(ks[10], (outsize,), dtype=jnp.float32)
    mlp2_beta = 0.1 * jax.random.normal(ks[11], (outsize,), dtype=jnp.float32)
    mlp2_mean = 0.1 * jax.random.normal(ks[12], (outsize,), dtype=jnp.float32)
    mlp2_var = jnp.abs(1.0 + 0.1 * jax.random.normal(ks[13], (outsize,), dtype=jnp.float32))

    args = (rgb, dep, w_rgb, w_dept,
            mlp1_w, mlp1_gamma, mlp1_beta, mlp1_mean, mlp1_var,
            mlp2_w, mlp2_gamma, mlp2_beta, mlp2_mean, mlp2_var)

    gate = jax.block_until_ready(lwa_forward(*args))
    ref = _reference(*args)

    assert gate.shape == (B, outsize, 1, 1), gate.shape
    assert jnp.allclose(gate, ref, atol=1e-4, rtol=1e-4), \
        float(jnp.max(jnp.abs(gate - ref)))

    print("KERNEL_OK")
</pallas_src>

<mosaic_0001>
module attributes {stable_mosaic.version = 11 : i64} {
  func.func @_lwa_kernel(%arg0: i32, %arg1: memref<1x32x256xf32, #tpu.memory_space<vmem>>, %arg2: memref<1x32x256xf32, #tpu.memory_space<vmem>>, %arg3: memref<32x32xf32, #tpu.memory_space<vmem>>, %arg4: memref<32x32xf32, #tpu.memory_space<vmem>>, %arg5: memref<32x24xf32, #tpu.memory_space<vmem>>, %arg6: memref<1x24xf32, #tpu.memory_space<vmem>>, %arg7: memref<16x24xf32, #tpu.memory_space<vmem>>, %arg8: memref<16x1xf32, #tpu.memory_space<vmem>>, %arg9: memref<1x16x1xf32, #tpu.memory_space<vmem>>) attributes {dimension_semantics = [#tpu.dimension_semantics<parallel>], iteration_bounds = array<i64: 2>, scalar_prefetch = 0 : i64, scratch_operands = 0 : i64, tpu.core_type = #tpu.core_type<tc>, window_params = [{transform_indices = @transform_0, window_bounds = array<i64: 1, 32, 256>}, {transform_indices = @transform_1, window_bounds = array<i64: 1, 32, 256>}, {pipeline_mode = #tpu.pipeline_mode<synchronous>, transform_indices = @transform_2, window_bounds = array<i64: 32, 32>}, {pipeline_mode = #tpu.pipeline_mode<synchronous>, transform_indices = @transform_3, window_bounds = array<i64: 32, 32>}, {pipeline_mode = #tpu.pipeline_mode<synchronous>, transform_indices = @transform_4, window_bounds = array<i64: 32, 24>}, {pipeline_mode = #tpu.pipeline_mode<synchronous>, transform_indices = @transform_5, window_bounds = array<i64: 1, 24>}, {pipeline_mode = #tpu.pipeline_mode<synchronous>, transform_indices = @transform_6, window_bounds = array<i64: 16, 24>}, {pipeline_mode = #tpu.pipeline_mode<synchronous>, transform_indices = @transform_7, window_bounds = array<i64: 16, 1>}, {transform_indices = @transform_8, window_bounds = array<i64: 1, 16, 1>}]} {
    %c0 = arith.constant 0 : index
    %c0_0 = arith.constant 0 : index
    %c0_1 = arith.constant 0 : index
    %0 = vector.load %arg1[%c0, %c0_0, %c0_1] : memref<1x32x256xf32, #tpu.memory_space<vmem>>, vector<1x32x256xf32>
    %1 = vector.shape_cast %0 : vector<1x32x256xf32> to vector<32x256xf32>
    %c0_2 = arith.constant 0 : index
    %c0_3 = arith.constant 0 : index
    %c0_4 = arith.constant 0 : index
    %2 = vector.load %arg2[%c0_2, %c0_3, %c0_4] : memref<1x32x256xf32, #tpu.memory_space<vmem>>, vector<1x32x256xf32>
    %3 = vector.shape_cast %2 : vector<1x32x256xf32> to vector<32x256xf32>
    %c0_5 = arith.constant 0 : index
    %c0_6 = arith.constant 0 : index
    %4 = vector.load %arg3[%c0_5, %c0_6] : memref<32x32xf32, #tpu.memory_space<vmem>>, vector<32x32xf32>
    %cst = arith.constant dense<0.000000e+00> : vector<32x256xf32>
    %5 = tpu.matmul %4, %1, %cst {dimension_numbers = #tpu.dot_dimension_numbers<[1], [0], [0], [1], [0, 0, 1, 1], [], []>} : vector<32x32xf32>, vector<32x256xf32>, vector<32x256xf32> -> vector<32x256xf32>
    %c0_7 = arith.constant 0 : index
    %c0_8 = arith.constant 0 : index
    %6 = vector.load %arg4[%c0_7, %c0_8] : memref<32x32xf32, #tpu.memory_space<vmem>>, vector<32x32xf32>
    %cst_9 = arith.constant dense<0.000000e+00> : vector<32x256xf32>
    %7 = tpu.matmul %6, %3, %cst_9 {dimension_numbers = #tpu.dot_dimension_numbers<[1], [0], [0], [1], [0, 0, 1, 1], [], []>} : vector<32x32xf32>, vector<32x256xf32>, vector<32x256xf32> -> vector<32x256xf32>
    %cst_10 = arith.constant 0.176776692 : f32
    %8 = vector.broadcast %cst_10 : f32 to vector<32x256xf32>
    %9 = arith.mulf %5, %8 : vector<32x256xf32>
    %cst_11 = arith.constant 0.000000e+00 : f32
    %10 = vector.broadcast %cst_11 : f32 to vector<1x256xf32>
    %11 = vector.extract_strided_slice %7 {offsets = [0, 0], sizes = [32, 128], strides = [1, 1]} : vector<32x256xf32> to vector<32x128xf32>
    %cst_12 = arith.constant dense<0.000000e+00> : vector<128x256xf32>
    %12 = tpu.matmul %11, %9, %cst_12 {dimension_numbers = #tpu.dot_dimension_numbers<[0], [0], [1], [1], [0, 1, 1, 1], [], []>} : vector<32x128xf32>, vector<32x256xf32>, vector<128x256xf32> -> vector<128x256xf32>
    %cst_13 = arith.constant dense<0xFF800000> : vector<128xf32>
    %13 = vector.multi_reduction <maximumf>, %12, %cst_13 [1] : vector<128x256xf32> to vector<128xf32>
    %14 = vector.shape_cast %13 : vector<128xf32> to vector<128x1xf32>
    %15 = vector.broadcast %14 : vector<128x1xf32> to vector<128x256xf32>
    %16 = arith.subf %12, %15 : vector<128x256xf32>
    %17 = math.exp %16 : vector<128x256xf32>
    %cst_14 = arith.constant dense<0.000000e+00> : vector<128xf32>
    %18 = vector.multi_reduction <add>, %17, %cst_14 [1] : vector<128x256xf32> to vector<128xf32>
    %19 = vector.shape_cast %18 : vector<128xf32> to vector<128x1xf32>
    %cst_15 = arith.constant 1.000000e+00 : f32
    %20 = vector.broadcast %cst_15 : f32 to vector<128x1xf32>
    %21 = arith.divf %20, %19 : vector<128x1xf32>
    %22 = vector.broadcast %21 : vector<128x1xf32> to vector<128x256xf32>
    %23 = arith.mulf %17, %22 : vector<128x256xf32>
    %cst_16 = arith.constant dense<0.000000e+00> : vector<256xf32>
    %24 = vector.multi_reduction <add>, %23, %cst_16 [0] : vector<128x256xf32> to vector<256xf32>
    %25 = vector.shape_cast %24 : vector<256xf32> to vector<1x256xf32>
    %26 = arith.addf %10, %25 : vector<1x256xf32>
    %27 = vector.extract_strided_slice %7 {offsets = [0, 128], sizes = [32, 128], strides = [1, 1]} : vector<32x256xf32> to vector<32x128xf32>
    %cst_17 = arith.constant dense<0.000000e+00> : vector<128x256xf32>
    %28 = tpu.matmul %27, %9, %cst_17 {dimension_numbers = #tpu.dot_dimension_numbers<[0], [0], [1], [1], [0, 1, 1, 1], [], []>} : vector<32x128xf32>, vector<32x256xf32>, vector<128x256xf32> -> vector<128x256xf32>
    %cst_18 = arith.constant dense<0xFF800000> : vector<128xf32>
    %29 = vector.multi_reduction <maximumf>, %28, %cst_18 [1] : vector<128x256xf32> to vector<128xf32>
    %30 = vector.shape_cast %29 : vector<128xf32> to vector<128x1xf32>
    %31 = vector.broadcast %30 : vector<128x1xf32> to vector<128x256xf32>
    %32 = arith.subf %28, %31 : vector<128x256xf32>
    %33 = math.exp %32 : vector<128x256xf32>
    %cst_19 = arith.constant dense<0.000000e+00> : vector<128xf32>
    %34 = vector.multi_reduction <add>, %33, %cst_19 [1] : vector<128x256xf32> to vector<128xf32>
    %35 = vector.shape_cast %34 : vector<128xf32> to vector<128x1xf32>
    %cst_20 = arith.constant 1.000000e+00 : f32
    %36 = vector.broadcast %cst_20 : f32 to vector<128x1xf32>
    %37 = arith.divf %36, %35 : vector<128x1xf32>
    %38 = vector.broadcast %37 : vector<128x1xf32> to vector<128x256xf32>
    %39 = arith.mulf %33, %38 : vector<128x256xf32>
    %cst_21 = arith.constant dense<0.000000e+00> : vector<256xf32>
    %40 = vector.multi_reduction <add>, %39, %cst_21 [0] : vector<128x256xf32> to vector<256xf32>
    %41 = vector.shape_cast %40 : vector<256xf32> to vector<1x256xf32>
    %42 = arith.addf %26, %41 : vector<1x256xf32>
    %43 = arith.addf %5, %7 : vector<32x256xf32>
    %44 = vector.broadcast %42 : vector<1x256xf32> to vector<32x256xf32>
    %45 = arith.mulf %43, %44 : vector<32x256xf32>
    %cst_22 = arith.constant dense<0.000000e+00> : vector<32xf32>
    %46 = vector.multi_reduction <add>, %45, %cst_22 [1] : vector<32x256xf32> to vector<32xf32>
    %47 = vector.shape_cast %46 : vector<32xf32> to vector<32x1xf32>
    %48 = arith.addf %1, %3 : vector<32x256xf32>
    %cst_23 = arith.constant dense<0.000000e+00> : vector<32xf32>
    %49 = vector.multi_reduction <add>, %48, %cst_23 [1] : vector<32x256xf32> to vector<32xf32>
    %50 = vector.shape_cast %49 : vector<32xf32> to vector<32x1xf32>
    %51 = arith.addf %47, %50 : vector<32x1xf32>
    %cst_24 = arith.constant 3.906250e-03 : f32
    %52 = vector.broadcast %cst_24 : f32 to vector<32x1xf32>
    %53 = arith.mulf %51, %52 : vector<32x1xf32>
    %c0_25 = arith.constant 0 : index
    %c0_26 = arith.constant 0 : index
    %54 = vector.load %arg5[%c0_25, %c0_26] : memref<32x24xf32, #tpu.memory_space<vmem>>, vector<32x24xf32>
    %55 = vector.broadcast %53 : vector<32x1xf32> to vector<32x24xf32>
    %56 = arith.mulf %54, %55 : vector<32x24xf32>
    %cst_27 = arith.constant dense<0.000000e+00> : vector<24xf32>
    %57 = vector.multi_reduction <add>, %56, %cst_27 [0] : vector<32x24xf32> to vector<24xf32>
    %58 = vector.shape_cast %57 : vector<24xf32> to vector<1x24xf32>
    %c0_28 = arith.constant 0 : index
    %c0_29 = arith.constant 0 : index
    %59 = vector.load %arg6[%c0_28, %c0_29] : memref<1x24xf32, #tpu.memory_space<vmem>>, vector<1x24xf32>
    %60 = arith.addf %58, %59 : vector<1x24xf32>
    %cst_30 = arith.constant 0.000000e+00 : f32
    %61 = vector.broadcast %cst_30 : f32 to vector<1x24xf32>
    %62 = arith.maximumf %60, %61 : vector<1x24xf32>
    %c0_31 = arith.constant 0 : index
    %c0_32 = arith.constant 0 : index
    %63 = vector.load %arg7[%c0_31, %c0_32] : memref<16x24xf32, #tpu.memory_space<vmem>>, vector<16x24xf32>
    %64 = vector.broadcast %62 : vector<1x24xf32> to vector<16x24xf32>
    %65 = arith.mulf %63, %64 : vector<16x24xf32>
    %cst_33 = arith.constant dense<0.000000e+00> : vector<16xf32>
    %66 = vector.multi_reduction <add>, %65, %cst_33 [1] : vector<16x24xf32> to vector<16xf32>
    %67 = vector.shape_cast %66 : vector<16xf32> to vector<16x1xf32>
    %c0_34 = arith.constant 0 : index
    %c0_35 = arith.constant 0 : index
    %68 = vector.load %arg8[%c0_34, %c0_35] : memref<16x1xf32, #tpu.memory_space<vmem>>, vector<16x1xf32>
    %69 = arith.addf %67, %68 : vector<16x1xf32>
    %cst_36 = arith.constant 0.000000e+00 : f32
    %70 = vector.broadcast %cst_36 : f32 to vector<16x1xf32>
    %71 = arith.subf %70, %69 : vector<16x1xf32>
    %72 = math.exp %71 : vector<16x1xf32>
    %cst_37 = arith.constant 1.000000e+00 : f32
    %73 = vector.broadcast %cst_37 : f32 to vector<16x1xf32>
    %74 = arith.addf %73, %72 : vector<16x1xf32>
    %cst_38 = arith.constant 1.000000e+00 : f32
    %75 = vector.broadcast %cst_38 : f32 to vector<16x1xf32>
    %76 = arith.divf %75, %74 : vector<16x1xf32>
    %c0_39 = arith.constant 0 : index
    %c0_40 = arith.constant 0 : index
    %c0_41 = arith.constant 0 : index
    %77 = vector.load %arg9[%c0_39, %c0_40, %c0_41] : memref<1x16x1xf32, #tpu.memory_space<vmem>>, vector<1x16x1xf32>
    %78 = vector.shape_cast %77 : vector<1x16x1xf32> to vector<16x1xf32>
    %79 = vector.shape_cast %76 : vector<16x1xf32> to vector<1x16x1xf32>
    tpu.vector_store %arg9[%c0_39, %c0_40, %c0_41], %79 {strides = array<i32>} : memref<1x16x1xf32, #tpu.memory_space<vmem>>, vector<1x16x1xf32>,
    return
  }
  func.func @transform_0(%arg0: i32) -> (i32, i32, i32) {
    %c0_i32 = arith.constant 0 : i32
    %c0_i32_0 = arith.constant 0 : i32
    %c0_i32_1 = arith.constant 0 : i32
    return %arg0, %c0_i32, %c0_i32_0 : i32, i32, i32
  }
  func.func @transform_1(%arg0: i32) -> (i32, i32, i32) {
    %c0_i32 = arith.constant 0 : i32
    %c0_i32_0 = arith.constant 0 : i32
    %c0_i32_1 = arith.constant 0 : i32
    return %arg0, %c0_i32, %c0_i32_0 : i32, i32, i32
  }
  func.func @transform_2(%arg0: i32) -> (i32, i32) {
    %c0_i32 = arith.constant 0 : i32
    %c0_i32_0 = arith.constant 0 : i32
    %c0_i32_1 = arith.constant 0 : i32
    return %c0_i32, %c0_i32_0 : i32, i32
  }
  func.func @transform_3(%arg0: i32) -> (i32, i32) {
    %c0_i32 = arith.constant 0 : i32
    %c0_i32_0 = arith.constant 0 : i32
    %c0_i32_1 = arith.constant 0 : i32
    return %c0_i32, %c0_i32_0 : i32, i32
  }
  func.func @transform_4(%arg0: i32) -> (i32, i32) {
    %c0_i32 = arith.constant 0 : i32
    %c0_i32_0 = arith.constant 0 : i32
    %c0_i32_1 = arith.constant 0 : i32
    return %c0_i32, %c0_i32_0 : i32, i32
  }
  func.func @transform_5(%arg0: i32) -> (i32, i32) {
    %c0_i32 = arith.constant 0 : i32
    %c0_i32_0 = arith.constant 0 : i32
    %c0_i32_1 = arith.constant 0 : i32
    return %c0_i32, %c0_i32_0 : i32, i32
  }
  func.func @transform_6(%arg0: i32) -> (i32, i32) {
    %c0_i32 = arith.constant 0 : i32
    %c0_i32_0 = arith.constant 0 : i32
    %c0_i32_1 = arith.constant 0 : i32
    return %c0_i32, %c0_i32_0 : i32, i32
  }
  func.func @transform_7(%arg0: i32) -> (i32, i32) {
    %c0_i32 = arith.constant 0 : i32
    %c0_i32_0 = arith.constant 0 : i32
    %c0_i32_1 = arith.constant 0 : i32
    return %c0_i32, %c0_i32_0 : i32, i32
  }
  func.func @transform_8(%arg0: i32) -> (i32, i32, i32) {
    %c0_i32 = arith.constant 0 : i32
    %c0_i32_0 = arith.constant 0 : i32
    %c0_i32_1 = arith.constant 0 : i32
    return %arg0, %c0_i32, %c0_i32_0 : i32, i32, i32
  }
}

</mosaic_0001>

<bundles_post_ra>
// kernel: tpu_custom_call.1
= control target key start
LH: loop header
LB: loop body
LE: loop exit
PB: predicated region body
PF: predicated region fallthrough
CT: control target
= control target key end

     0   :  { %s3359_s0 = inlined_call_operand.hbm [shape: f32[2,32,256], index: 0, kind: input, shape index: {}]   ;;  %s3360_s1 = inlined_call_operand.hbm [shape: f32[2,32,256], index: 1, kind: input, shape index: {}]   ;;  %s3361_s2 = inlined_call_operand.vmem [shape: f32[32,32], index: 2, kind: input, shape index: {}]   ;;  %s3362_s3 = inlined_call_operand.vmem [shape: f32[32,32], index: 3, kind: input, shape index: {}]   ;;  %s3363_s4 = inlined_call_operand.vmem [shape: f32[32,24], index: 4, kind: input, shape index: {}]   ;;  %s3364_s5 = inlined_call_operand.vmem [shape: f32[1,24], index: 5, kind: input, shape index: {}]   ;;  %s3365_s6 = inlined_call_operand.hbm [shape: f32[16,24], index: 6, kind: input, shape index: {}]   ;;  %s3366_s7 = inlined_call_operand.vmem [shape: f32[16,1], index: 7, kind: input, shape index: {}]   ;;  %s3367_s8 = inlined_call_operand.vmem [shape: f32[2,16,1], index: 8, kind: output, shape index: {}]  }
   0x1   :  { %3409 = sst [smem:[#allocation45_spill]] %s3359_s0 }
   0x2   :  { %3410 = sst [smem:[#allocation46_spill]] %s3365_s6 }
   0x3   :  { %13 = vsyncpa [#allocation3], 0 }
   0x4   :  { %15 = vsyncpa [#allocation3 + $0x1], 0 }
   0x5   :  { %16 = vsyncpa [#allocation5], 0 }
   0x6   :  { %18 = vsyncpa [#allocation5 + $0x1], 0  ;;  %s2458_s27 = smov 0   ;;  %s2460_s28 = smov 0  }
   0x7   :  { %s2462_s29 = smov 0   ;;  %s2464_s30 = smov 0  }
   0x8 LB: > { %s2477_s9 = sadd.s32 4294967295, %s2403_s30   ;;  %p44_p0 = scmp.ne.s32.totalorder %s2395_s28, %s2391_s27  ;;  %s2403_s30 = sphi %s2464_s30, %s3522_s30   ;;  %s2399_s29 = sphi %s2462_s29, %s3521_s29   ;;  %s2395_s28 = sphi %s2460_s28, %s3520_s28   ;;  %s2391_s27 = sphi %s2458_s27, %s3519_s27  }
   0x9   : > { %p3368_p1 = scmp.eq.s32.totalorder %s2477_s9, 0  ;;  %p1911_p2 = scmp.ge.s32.totalorder %s2403_s30, 1 }
   0xa   : > { %p233_p3 = scmp.lt.s32.totalorder %s2403_s30, 3  ;;  %s2405_s12 = smov [#allocation6]  }
   0xb   : > { %p2485_p4 = por %p3368_p1, %p44_p0  ;;  %s257_s13 = sshll.u32 %s2405_s12, 4  ;;  %s258_s13 = int_to_ptr.vmem [resolvable:$true] %s257_s13 }
   0xc   : > { %p2489_p5 = pnand %p1911_p2, %p233_p3  ;;  %s2502_s15 = sadd.s32 1, %s2403_s30  }
   0xd   : > { %s3411_s10 = scalar_select %p2485_p4, 1, 0 }
   0xe   : > { %s3412_s11 = scalar_select %p2489_p5, 1, 0 }
   0xf   : > { %p2011_p6 = pneg %p2489_p5  ;;  %s31_s16 = sadd.s32 1, %s2399_s29 }
  0x10   : > { %s28_s17 = ssub.s32 %s2403_s30, %s2502_s15  ;;  %s3414_s6 = sld [smem:[#allocation46_spill]] }
  0x11   : > { %p2497_p7 = pnand %p2011_p6, %p3368_p1 }
  0x13   : > { %p2275_p9 = pneg %p2497_p7 }
  0x16   : > { %s2273_s20 = scalar_lea.hbm %s3414_s6, 256 }
  0x17   : > { %p2274_p8 = scmp.ne.s32.totalorder %s3414_s6, %s2273_s20  ;;  %p2280_p12 = scmp.lt.u32.totalorder %s2273_s20, %s3414_s6 }
  0x19   : > { %p2276_p10 = pnand %p2275_p9, %p2274_p8 }
  0x1b   : > { %p2277_p11 = pneg %p2276_p10 }
  0x1d   : > { %p2282_p13 = pnand %p2280_p12, %p2277_p11 }
  0x1f   : > { %2285 = shalt.err (!%p2282_p13)
}
  0x20   : > { %s2286_s25 = scalar_lea.vmem %s258_s13, 256  ;;  %p2294_p6 = scmp.lt.s32.totalorder %s258_s13, %s258_s13 }
  0x21   : > { %p2287_p0 = scmp.ne.s32.totalorder %s258_s13, %s2286_s25  ;;  %p2295_p1 = scmp.lt.s32.totalorder %s2286_s25, %s2286_s25 }
  0x23   : > { %p2289_p2 = pnand %p2287_p0, %p2275_p9  ;;  %p2296_p4 = por %p2295_p1, %p2294_p6 }
  0x25   : > { %p2290_p3 = pneg %p2289_p2 }
  0x27   : > { %p2297_p5 = pnand %p2296_p4, %p2290_p3 }
  0x29   : > { %2300 = shalt.err (!%p2297_p5)
}
  0x2a   : > { %s2406_s26 = smov 128   ;;  %s2407_s27 = smov 8  }
  0x2b   : > { %2014 = dma.hbm_to_vmem [thread:$0]  (!%p2497_p7), %s3414_s6, 256, %s258_s13, [#allocation5], %s2406_s26, %s2406_s26, %s2407_s27  }
  0x2c   : > { %p29_p8 = scmp.eq.s32.totalorder %s28_s17, 0  ;;  %p38_p1 = scmp.ne.s32.totalorder %s2399_s29, %s2395_s28 }
  0x2d   : > { %p39_p4 = scmp.eq.s32.totalorder %s2403_s30, 0  ;;  %p2023_p5 = scmp.lt.s32.totalorder %s2403_s30, 2 }
  0x2e   : > { %s2528_s19 = scalar_select %p29_p8, %s2399_s29, %s31_s16  }
  0x2f   : > { %p40_p9 = por %p39_p4, %p38_p1  ;;  %s274_s20 = sand.u32 1, %s2399_s29  }
  0x30   : > { %s2531_s21 = sshll.u32 %s274_s20, 6  ;;  %s1968_s22 = sshll.u32 %s2403_s30, 10 }
  0x31   : > { %s3415_s0 = sld [smem:[#allocation45_spill]]  ;;  %s278_s13 = scalar_lea.vmem [#allocation2], %s2531_s21 }
  0x32   : > { %s285_s17 = sshll.u32 %s278_s13, 4  ;;  %p2544_p7 = pnand %p2023_p5, %p40_p9  ;;  %s2542_s17 = int_to_ptr.vmem [resolvable:$true] %s285_s17 }
  0x33   : > { %s2548_s25 = scalar_lea.sflag [#allocation3], %s274_s20 }
  0x34   : > { %p2303_p11 = pneg %p2544_p7 }
  0x37   : > { %s2539_s14 = scalar_lea.hbm %s3415_s0, %s1968_s22  ;;  %s2306_s18 = scalar_lea.hbm %s3415_s0, 2048 }
  0x38   : > { %s2301_s26 = scalar_lea.hbm %s2539_s14, 1024  ;;  %p2307_p0 = scmp.lt.u32.totalorder %s2539_s14, %s3415_s0 }
  0x39   : > { %p2302_p10 = scmp.ne.s32.totalorder %s2539_s14, %s2301_s26  ;;  %p2308_p2 = scmp.lt.u32.totalorder %s2306_s18, %s2301_s26 }
  0x3a   : > { %p2310_p6 = scmp.lt.u32.totalorder %s2301_s26, %s2539_s14 }
  0x3b   : > { %p2304_p12 = pnand %p2303_p11, %p2302_p10  ;;  %p2309_p3 = por %p2308_p2, %p2307_p0 }
  0x3d   : > { %p2305_p13 = pneg %p2304_p12  ;;  %p2311_p8 = por %p2310_p6, %p2309_p3 }
  0x3f   : > { %p2312_p1 = pnand %p2311_p8, %p2305_p13 }
  0x41   : > { %2315 = shalt.err (!%p2312_p1)
}
  0x42   : > { %s2316_s20 = scalar_lea.vmem %s2542_s17, 1024  ;;  %s2408_s13 = smov [#allocation2]  }
  0x43   : > { %p2317_p4 = scmp.ne.s32.totalorder %s2542_s17, %s2316_s20  ;;  %s2321_s27 = sshll.u32 %s2408_s13, 4  ;;  %s2322_s27 = int_to_ptr.vmem [resolvable:$false] %s2321_s27 }
  0x44   : > { %s2323_s12 = scalar_lea.vmem %s2322_s27, 2048  ;;  %p2324_p10 = scmp.lt.s32.totalorder %s2542_s17, %s2322_s27 }
  0x45   : > { %p2319_p5 = pnand %p2317_p4, %p2303_p11  ;;  %p2325_p12 = scmp.lt.s32.totalorder %s2323_s12, %s2316_s20 }
  0x47   : > { %p2320_p9 = pneg %p2319_p5  ;;  %p2326_p0 = por %p2325_p12, %p2324_p10 }
  0x49   : > { %p2327_p2 = pnand %p2326_p0, %p2320_p9 }
  0x4b   : > { %2330 = shalt.err (!%p2327_p2)
}
  0x4c   : > { %s2409_s26 = smov 256   ;;  %s2410_s18 = smov 16  }
  0x4d   : > { %2018 = dma.hbm_to_vmem [thread:$0]  (!%p2544_p7), %s2539_s14, 1024, %s2542_s17, %s2548_s25, %s2409_s26, %s2409_s26, %s2410_s18  }
  0x4e   : > { %s2584_s20 = scalar_lea.hbm %s3360_s1, %s1968_s22  ;;  %s299_s13 = scalar_lea.vmem [#allocation4], %s2531_s21 }
  0x4f   : > { %s306_s27 = sshll.u32 %s299_s13, 4  ;;  %s295_s12 = sand.u32 1, %s2403_s30   ;;  %s2587_s27 = int_to_ptr.vmem [resolvable:$true] %s306_s27 }
  0x50   : > { %s2590_s0 = scalar_lea.sflag [#allocation5], %s295_s12  ;;  %s2331_s6 = scalar_lea.hbm %s2584_s20, 1024 }
  0x51   : > { %p2332_p13 = scmp.ne.s32.totalorder %s2584_s20, %s2331_s6  ;;  %s2336_s17 = scalar_lea.hbm %s3360_s1, 2048 }
  0x52   : > { %p2337_p8 = scmp.lt.u32.totalorder %s2584_s20, %s3360_s1  ;;  %p2338_p1 = scmp.lt.u32.totalorder %s2336_s17, %s2331_s6 }
  0x53   : > { %p2334_p3 = pnand %p2332_p13, %p2303_p11  ;;  %p2340_p5 = scmp.lt.u32.totalorder %s2331_s6, %s2584_s20 }
  0x54   : > { %p2339_p4 = por %p2338_p1, %p2337_p8 }
  0x55   : > { %p2335_p6 = pneg %p2334_p3 }
  0x56   : > { %p2341_p9 = por %p2340_p5, %p2339_p4 }
  0x58   : > { %p2342_p10 = pnand %p2341_p9, %p2335_p6 }
  0x5a   : > { %2345 = shalt.err (!%p2342_p10)
}
  0x5b   : > { %s2346_s30 = scalar_lea.vmem %s2587_s27, 1024  ;;  %s2411_s21 = smov [#allocation4]  }
  0x5c   : > { %p2347_p12 = scmp.ne.s32.totalorder %s2587_s27, %s2346_s30  ;;  %s2351_s24 = sshll.u32 %s2411_s21, 4  ;;  %s2352_s24 = int_to_ptr.vmem [resolvable:$false] %s2351_s24 }
  0x5d   : > { %s2353_s13 = scalar_lea.vmem %s2352_s24, 2048  ;;  %p2354_p13 = scmp.lt.s32.totalorder %s2587_s27, %s2352_s24 }
  0x5e   : > { %p2349_p0 = pnand %p2347_p12, %p2303_p11  ;;  %p2355_p3 = scmp.lt.s32.totalorder %s2353_s13, %s2346_s30 }
  0x60   : > { %p2350_p2 = pneg %p2349_p0  ;;  %p2356_p8 = por %p2355_p3, %p2354_p13 }
  0x62   : > { %p2357_p1 = pnand %p2356_p8, %p2350_p2 }
  0x64   : > { %2360 = shalt.err (!%p2357_p1)
}
  0x65   : > { %2021 = dma.hbm_to_vmem [thread:$0]  (!%p2544_p7), %s2584_s20, 1024, %s2587_s27, %s2590_s0, %s2409_s26, %s2409_s26, %s2410_s18  }
  0x66   : > { %p3417_p11 = scmp.ne.s32.totalorder %s3412_s11, 0 }
  0x68   : > { %318 = sbr.rel (%p3417_p11) target bundleno = 1445 (0x5a5), region = 52 }
  0x6f   : > { %s320_s6 = sand.u32 1, %s2395_s28   ;;  %p3418_p6 = scmp.ne.s32.totalorder %s3411_s10, 0 }
  0x70   : > { %s1921_s12 = sshll.u32 %s320_s6, 6  ;;  %s321_s14 = scalar_lea.sflag [#allocation3], %s320_s6 }
  0x71   : > { %s2622_s22 = scalar_lea.vmem [#allocation2], %s1921_s12 }
  0x72   : > { %2378 = dma.done.wait (%p3418_p6), %s321_s14, 1024  }
  0x73   : > { %2380 = vsyncadd (%p3418_p6), %s321_s14, 4294966272  ;;  %s329_s16 = sand.u32 1, %s2477_s9   ;;  %s2629_s0 = scalar_lea.vmem [#allocation4], %s1921_s12 }
  0x74   : > { %s330_s17 = scalar_lea.sflag [#allocation5], %s329_s16 }
  0x75   : > { %2382 = dma.done.wait (%p3418_p6), %s330_s17, 1024  }
  0x76   : > { %2384 = vsyncadd (%p3418_p6), %s330_s17, 4294966272  ;;  %p3419_p7 = scmp.eq.s32.totalorder %s2477_s9, 0 }
  0x78   : > { %2386 = dma.done.wait (%p3419_p7), [#allocation5], 256   ;;  %p3420_p4 = pmov %p3419_p7 }
  0x79   : > { %v2412_v0 = vmov 0.0   ;;  %v381_v1 = vld [vmem:[%s2622_s22 + $0x8] sm:$0xff]  ;;  %v383_v2 = vld [vmem:[%s2622_s22 + $0x18] sm:$0xff]  ;;  %v380_v7 = vld [vmem:[%s2622_s22] sm:$0xff]  ;;  %vm400_vm0 = vcmask 261120   ;;  %vm1761_vm1 = vcmask 195584  }
  0x7a   : > { %2388 = vsyncadd (%p3420_p4), [#allocation5], 4294967040  ;;  %477 = vmatprep.mubr.f32.mxu0 %v2412_v0  ;;  %582 = vmatprep.mubr.f32.mxu1 %v2412_v0  ;;  %v389_v3 = vld [vmem:[%s2629_s0 + $0x8] sm:$0xff]  ;;  %v1971_v4 = vpack.c.bf16 %v383_v2, %v381_v1  ;;  %v391_v5 = vld [vmem:[%s2629_s0 + $0x18] sm:$0xff]  ;;  %p375_p5 = scmp.lt.s32.totalorder %s2477_s9, 1  ;;  %vm1808_vm2 = vcmask 7168  }
  0x7b   : > { %v2645_v6 = vadd.f32 %v389_v3, %v381_v1  ;;  %v382_v8 = vld [vmem:[%s2622_s22 + $0x10] sm:$0xff]  ;;  %v1979_v9 = vpack.c.bf16 %v391_v5, %v389_v3  ;;  %v2649_v10 = vadd.f32 %v391_v5, %v383_v2  ;;  %v388_v12 = vld [vmem:[%s2629_s0] sm:$0xff]  ;;  %v385_v14 = vld [vmem:[%s2622_s22 + $0x28] sm:$0xff] }
  0x7c   : > { %v1973_v11 = vpack.c.bf16 %v382_v8, %v380_v7  ;;  %v390_v13 = vld [vmem:[%s2629_s0 + $0x10] sm:$0xff]  ;;  %1972 = vmatprep.subr.bf16.mxu0 %v1971_v4  ;;  %v387_v17 = vld [vmem:[%s2622_s22 + $0x38] sm:$0xff]  ;;  %v393_v18 = vld [vmem:[%s2629_s0 + $0x28] sm:$0xff]  ;;  %s3524_s9 = smov (!%p375_p5, %s2477_s9), 1 }
  0x7d   : > { %3421 = vst [vmem:[#allocation10_spill] sm:$0xff] %v2645_v6  ;;  %3422 = vst [vmem:[#allocation11_spill] sm:$0xff] %v2649_v10  ;;  %v1981_v15 = vpack.c.bf16 %v390_v13, %v388_v12  ;;  %v2654_v16 = vadd.f32 %v390_v13, %v382_v8  ;;  %v395_v19 = vld [vmem:[%s2629_s0 + $0x38] sm:$0xff]  ;;  %1980 = vmatprep.subr.bf16.mxu1 %v1979_v9  ;;  %v1975_v20 = vpack.c.bf16 %v387_v17, %v385_v14  ;;  %v384_v22 = vld [vmem:[%s2622_s22 + $0x20] sm:$0xff]  ;;  %s1970_s13 = sshll.u32 %s3524_s9, 4 }
  0x7e   : > { %1974 = vmatpush1.bf16.msra.mxu0 %v1973_v11  ;;  %v1983_v21 = vpack.c.bf16 %v395_v19, %v393_v18  ;;  %v386_v23 = vld [vmem:[%s2622_s22 + $0x30] sm:$0xff]  ;;  %v392_v24 = vld [vmem:[%s2629_s0 + $0x20] sm:$0xff]  ;;  %v397_v30 = vld [vmem:[%s3361_s2 + $0x8] sm:$0xff]  ;;  %s379_s14 = scalar_lea.vmem %s3367_s8, %s1970_s13 }
  0x7f   : > { %3423 = vst [vmem:[#allocation12_spill] sm:$0xff] %v2654_v16  ;;  %1982 = vmatpush1.bf16.msra.mxu1 %v1981_v15  ;;  %v1977_v25 = vpack.c.bf16 %v386_v23, %v384_v22  ;;  %v394_v26 = vld [vmem:[%s2629_s0 + $0x30] sm:$0xff]  ;;  %1976 = vmatprep.subr.bf16.mxu0 %v1975_v20  ;;  %v396_v28 = vld [vmem:[%s3361_s2] sm:$0xff]  ;;  %v503_v31 = vld [vmem:[%s3362_s3 + $0x8] sm:$0xff] }
  0x80   : > { %1984 = vmatprep.subr.bf16.mxu1 %v1983_v21  ;;  %v1985_v27 = vpack.c.bf16 %v394_v26, %v392_v24  ;;  %v502_v29 = vld [vmem:[%s3362_s3] sm:$0xff]  ;;  %v398_v32 = vld [vmem:[%s3361_s2 + $0x10] sm:$0xff]  ;;  %v399_v34 = vld [vmem:[%s3361_s2 + $0x18] sm:$0xff] }
  0x81   : > { %v504_v33 = vld [vmem:[%s3362_s3 + $0x10] sm:$0xff]  ;;  %v505_v35 = vld [vmem:[%s3362_s3 + $0x18] sm:$0xff] }
  0x82   : > { %1978 = vmatpush1.bf16.msra.mxu0 %v1977_v25 }
  0x83   : > { %1986 = vmatpush1.bf16.msra.mxu1 %v1985_v27 }
  0x85   : > { %1926 = vmatmul.mubr.msk.f32.vlgmr.msra.gmra.mrb[0].mxu0 %vm400_vm0, %v396_v28 }
  0x86   : > { %1930 = vmatmul.mubr.msk.f32.vlgmr.msra.gmra.mrb[0].mxu1 %vm400_vm0, %v502_v29  ;;  %483 = vmatprep.mubr.f32.mxu0 %v2412_v0 }
  0x87   : > { %588 = vmatprep.mubr.f32.mxu1 %v2412_v0 }
  0x89   : > { %1927 = vmatmul.mubr.msk.f32.gmra.mrb[2].mxu0 %vm400_vm0, %v397_v30 }
  0x8a   : > { %1931 = vmatmul.mubr.msk.f32.gmra.mrb[2].mxu1 %vm400_vm0, %v503_v31  ;;  %489 = vmatprep.mubr.f32.mxu0 %v2412_v0 }
  0x8b   : > { %594 = vmatprep.mubr.f32.mxu1 %v2412_v0 }
  0x8d   : > { %1928 = vmatmul.mubr.msk.f32.gmra.mrb[4].mxu0 %vm400_vm0, %v398_v32 }
  0x8e   : > { %1932 = vmatmul.mubr.msk.f32.gmra.mrb[4].mxu1 %vm400_vm0, %v504_v33  ;;  %495 = vmatprep.mubr.f32.mxu0 %v2412_v0 }
  0x8f   : > { %600 = vmatprep.mubr.f32.mxu1 %v2412_v0 }
  0x91   : > { %1929 = vmatmul.mubr.msk.f32.gmra.mrb[6].mxu0 %vm400_vm0, %v399_v34 }
  0x92   : > { %1933 = vmatmul.mubr.msk.f32.gmra.mrb[6].mxu1 %vm400_vm0, %v505_v35  ;;  %759 = vmatprep.mubr.f32.mxu0 %v2412_v0 }
  0x93   : > { %1300 = vmatprep.mubr.f32.mxu1 %v2412_v0 }
 0x158   : > { %v479_v36 = vpop.f32.mrb[0].mxu0 }
 0x159   : > { %v584_v37 = vpop.f32.mrb[0].mxu1  ;;  %v481_v38 = vpop.f32.mrb[1].mxu0  ;;  %v607_v41 = vmul.f32 0.17677669, %v479_v36 }
 0x15a   : > { %v2703_v39 = vadd.f32 %v584_v37, %v479_v36  ;;  %615 = vxpose.xlu0.b32.start [1/4] (short) %v584_v37, 128  ;;  %v586_v40 = vpop.f32.mrb[1].mxu1  ;;  %v608_v43 = vmul.f32 0.17677669, %v481_v38 }
 0x15b   : > { %v2705_v42 = vadd.f32 %v586_v40, %v481_v38  ;;  %1156 = vxpose.xlu1.b32.start [1/4] (short) %v586_v40, 128 }
 0x15c   : > { %3424 = vst [vmem:[#allocation13_spill] sm:$0xff] %v2703_v39  ;;  %v485_v44 = vpop.f32.mrb[2].mxu0 }
 0x15d   : > { %3425 = vst [vmem:[#allocation14_spill] sm:$0xff] %v2705_v42  ;;  %v609_v45 = vmul.f32 0.17677669, %v485_v44  ;;  %v590_v46 = vpop.f32.mrb[2].mxu1  ;;  %v487_v47 = vpop.f32.mrb[3].mxu0 }
 0x15e   : > { %v2707_v48 = vadd.f32 %v590_v46, %v485_v44  ;;  %616 = vxpose.xlu0.b32.cont [2/4] (short) %v590_v46, 128  ;;  %v610_v49 = vmul.f32 0.17677669, %v487_v47  ;;  %v592_v50 = vpop.f32.mrb[3].mxu1 }
 0x15f   : > { %v1989_v51 = vpack.c.bf16 %v609_v45, %v607_v41  ;;  %v2709_v52 = vadd.f32 %v592_v50, %v487_v47  ;;  %1157 = vxpose.xlu1.b32.cont [2/4] (short) %v592_v50, 128 }
 0x160   : > { %3426 = vst [vmem:[#allocation15_spill] sm:$0xff] %v2707_v48  ;;  %v1987_v53 = vpack.c.bf16 %v610_v49, %v608_v43  ;;  %v491_v54 = vpop.f32.mrb[4].mxu0 }
 0x161   : > { %3427 = vst [vmem:[#allocation16_spill] sm:$0xff] %v2709_v52  ;;  %v596_v55 = vpop.f32.mrb[4].mxu1  ;;  %v493_v56 = vpop.f32.mrb[5].mxu0  ;;  %v611_v59 = vmul.f32 0.17677669, %v491_v54 }
 0x162   : > { %v2711_v57 = vadd.f32 %v596_v55, %v491_v54  ;;  %617 = vxpose.xlu0.b32.cont [3/4] (short) %v596_v55, 128  ;;  %v598_v58 = vpop.f32.mrb[5].mxu1  ;;  %1988 = vmatprep.subr.bf16.mxu0 %v1987_v53  ;;  %v612_v61 = vmul.f32 0.17677669, %v493_v56 }
 0x163   : > { %v2713_v60 = vadd.f32 %v598_v58, %v493_v56  ;;  %1158 = vxpose.xlu1.b32.cont [3/4] (short) %v598_v58, 128  ;;  %1996 = vmatprep.subr.bf16.mxu1 %v1987_v53 }
 0x164   : > { %3428 = vst [vmem:[#allocation17_spill] sm:$0xff] %v2711_v57  ;;  %v497_v62 = vpop.f32.mrb[6].mxu0  ;;  %1990 = vmatpush1.bf16.msra.mxu0 %v1989_v51  ;;  %1998 = vmatpush1.bf16.msra.mxu1 %v1989_v51 }
 0x165   : > { %3429 = vst [vmem:[#allocation18_spill] sm:$0xff] %v2713_v60  ;;  %v613_v63 = vmul.f32 0.17677669, %v497_v62  ;;  %v602_v1 = vpop.f32.mrb[6].mxu1  ;;  %v499_v2 = vpop.f32.mrb[7].mxu0 }
 0x166   : > { %v2715_v3 = vadd.f32 %v602_v1, %v497_v62  ;;  %618 = vxpose.xlu0.b32.end [4/4] (short) %v602_v1, 128  ;;  %v614_v4 = vmul.f32 0.17677669, %v499_v2  ;;  %v604_v5 = vpop.f32.mrb[7].mxu1 }
 0x167   : > { %v1993_v7 = vpack.c.bf16 %v613_v63, %v611_v59  ;;  %v2717_v8 = vadd.f32 %v604_v5, %v499_v2  ;;  %1159 = vxpose.xlu1.b32.end [4/4] (short) %v604_v5, 128 }
 0x168   : > { %3430 = vst [vmem:[#allocation19_spill] sm:$0xff] %v2715_v3  ;;  %v1991_v9 = vpack.c.bf16 %v614_v4, %v612_v61 }
 0x169   : > { %3431 = vst [vmem:[#allocation20_spill] sm:$0xff] %v2717_v8 }
 0x16a   : > { %1992 = vmatprep.subr.bf16.mxu0 %v1991_v9  ;;  %2000 = vmatprep.subr.bf16.mxu1 %v1991_v9 }
 0x16b   : > { %1994 = vmatpush1.bf16.msra.mxu0 %v1993_v7  ;;  %2002 = vmatpush1.bf16.msra.mxu1 %v1993_v7 }
 0x1da   : > { %v631_v11 = vpop.trf.xlu0 }
 0x1db   : > { %v1172_v12 = vpop.trf.xlu1  ;;  %1934 = vmatmul.mubr.msk.f32.vlgmr.msra.gmra.mrb[8].mxu0 %vm400_vm0, %v631_v11 }
 0x1dc   : > { %1950 = vmatmul.mubr.msk.f32.vlgmr.msra.gmra.mrb[8].mxu1 %vm400_vm0, %v1172_v12  ;;  %765 = vmatprep.mubr.f32.mxu0 %v2412_v0 }
 0x1dd   : > { %1306 = vmatprep.mubr.f32.mxu1 %v2412_v0 }
 0x1de   : > { %v632_v13 = vpop.trf.xlu0 }
 0x1df   : > { %1935 = vmatmul.mubr.msk.f32.gmra.mrb[10].mxu0 %vm400_vm0, %v632_v13  ;;  %v1173_v14 = vpop.trf.xlu1 }
 0x1e0   : > { %771 = vmatprep.mubr.f32.mxu0 %v2412_v0  ;;  %1951 = vmatmul.mubr.msk.f32.gmra.mrb[10].mxu1 %vm400_vm0, %v1173_v14 }
 0x1e1   : > { %1312 = vmatprep.mubr.f32.mxu1 %v2412_v0 }
 0x1e2   : > { %v633_v15 = vpop.trf.xlu0 }
 0x1e3   : > { %1936 = vmatmul.mubr.msk.f32.gmra.mrb[12].mxu0 %vm400_vm0, %v633_v15  ;;  %v1174_v17 = vpop.trf.xlu1 }
 0x1e4   : > { %777 = vmatprep.mubr.f32.mxu0 %v2412_v0  ;;  %1952 = vmatmul.mubr.msk.f32.gmra.mrb[12].mxu1 %vm400_vm0, %v1174_v17 }
 0x1e5   : > { %1318 = vmatprep.mubr.f32.mxu1 %v2412_v0 }
 0x1e6   : > { %v634_v18 = vpop.trf.xlu0 }
 0x1e7   : > { %1937 = vmatmul.mubr.msk.f32.gmra.mrb[14].mxu0 %vm400_vm0, %v634_v18  ;;  %v1175_v19 = vpop.trf.xlu1 }
 0x1e8   : > { %783 = vmatprep.mubr.f32.mxu0 %v2412_v0  ;;  %1953 = vmatmul.mubr.msk.f32.gmra.mrb[14].mxu1 %vm400_vm0, %v1175_v19 }
 0x1e9   : > { %1324 = vmatprep.mubr.f32.mxu1 %v2412_v0 }
 0x1ea   : > { %v635_v20 = vpop.trf.xlu0 }
 0x1eb   : > { %1938 = vmatmul.mubr.msk.f32.gmra.mrb[16].mxu0 %vm400_vm0, %v635_v20  ;;  %v1176_v21 = vpop.trf.xlu1 }
 0x1ec   : > { %789 = vmatprep.mubr.f32.mxu0 %v2412_v0  ;;  %1954 = vmatmul.mubr.msk.f32.gmra.mrb[16].mxu1 %vm400_vm0, %v1176_v21 }
 0x1ed   : > { %1330 = vmatprep.mubr.f32.mxu1 %v2412_v0 }
 0x1ee   : > { %v636_v22 = vpop.trf.xlu0 }
 0x1ef   : > { %1939 = vmatmul.mubr.msk.f32.gmra.mrb[18].mxu0 %vm400_vm0, %v636_v22  ;;  %v1177_v23 = vpop.trf.xlu1 }
 0x1f0   : > { %795 = vmatprep.mubr.f32.mxu0 %v2412_v0  ;;  %1955 = vmatmul.mubr.msk.f32.gmra.mrb[18].mxu1 %vm400_vm0, %v1177_v23 }
 0x1f1   : > { %1336 = vmatprep.mubr.f32.mxu1 %v2412_v0 }
 0x1f2   : > { %v637_v24 = vpop.trf.xlu0 }
 0x1f3   : > { %1940 = vmatmul.mubr.msk.f32.gmra.mrb[20].mxu0 %vm400_vm0, %v637_v24  ;;  %v1178_v25 = vpop.trf.xlu1 }
 0x1f4   : > { %801 = vmatprep.mubr.f32.mxu0 %v2412_v0  ;;  %1956 = vmatmul.mubr.msk.f32.gmra.mrb[20].mxu1 %vm400_vm0, %v1178_v25 }
 0x1f5   : > { %1342 = vmatprep.mubr.f32.mxu1 %v2412_v0 }
 0x1f6   : > { %v638_v26 = vpop.trf.xlu0 }
 0x1f7   : > { %1941 = vmatmul.mubr.msk.f32.gmra.mrb[22].mxu0 %vm400_vm0, %v638_v26  ;;  %v1179_v27 = vpop.trf.xlu1 }
 0x1f8   : > { %807 = vmatprep.mubr.f32.mxu0 %v2412_v0  ;;  %1957 = vmatmul.mubr.msk.f32.gmra.mrb[22].mxu1 %vm400_vm0, %v1179_v27 }
 0x1f9   : > { %1348 = vmatprep.mubr.f32.mxu1 %v2412_v0 }
 0x1fa   : > { %v639_v28 = vpop.trf.xlu0 }
 0x1fb   : > { %1942 = vmatmul.mubr.msk.f32.gmra.mrb[24].mxu0 %vm400_vm0, %v639_v28  ;;  %v1180_v29 = vpop.trf.xlu1 }
 0x1fc   : > { %813 = vmatprep.mubr.f32.mxu0 %v2412_v0  ;;  %1958 = vmatmul.mubr.msk.f32.gmra.mrb[24].mxu1 %vm400_vm0, %v1180_v29 }
 0x1fd   : > { %1354 = vmatprep.mubr.f32.mxu1 %v2412_v0 }
 0x1fe   : > { %v640_v30 = vpop.trf.xlu0 }
 0x1ff   : > { %1943 = vmatmul.mubr.msk.f32.gmra.mrb[26].mxu0 %vm400_vm0, %v640_v30  ;;  %v1181_v31 = vpop.trf.xlu1 }
 0x200   : > { %819 = vmatprep.mubr.f32.mxu0 %v2412_v0  ;;  %1959 = vmatmul.mubr.msk.f32.gmra.mrb[26].mxu1 %vm400_vm0, %v1181_v31 }
 0x201   : > { %1360 = vmatprep.mubr.f32.mxu1 %v2412_v0 }
 0x202   : > { %v641_v32 = vpop.trf.xlu0 }
 0x203   : > { %1944 = vmatmul.mubr.msk.f32.gmra.mrb[28].mxu0 %vm400_vm0, %v641_v32  ;;  %v1182_v33 = vpop.trf.xlu1 }
 0x204   : > { %825 = vmatprep.mubr.f32.mxu0 %v2412_v0  ;;  %1960 = vmatmul.mubr.msk.f32.gmra.mrb[28].mxu1 %vm400_vm0, %v1182_v33 }
 0x205   : > { %1366 = vmatprep.mubr.f32.mxu1 %v2412_v0 }
 0x206   : > { %v642_v34 = vpop.trf.xlu0 }
 0x207   : > { %1945 = vmatmul.mubr.msk.f32.gmra.mrb[30].mxu0 %vm400_vm0, %v642_v34  ;;  %v1183_v35 = vpop.trf.xlu1 }
 0x208   : > { %831 = vmatprep.mubr.f32.mxu0 %v2412_v0  ;;  %1961 = vmatmul.mubr.msk.f32.gmra.mrb[30].mxu1 %vm400_vm0, %v1183_v35 }
 0x209   : > { %1372 = vmatprep.mubr.f32.mxu1 %v2412_v0 }
 0x20a   : > { %v643_v36 = vpop.trf.xlu0 }
 0x20b   : > { %1946 = vmatmul.mubr.msk.f32.gmra.mrb[32].mxu0 %vm400_vm0, %v643_v36  ;;  %v1184_v37 = vpop.trf.xlu1 }
 0x20c   : > { %837 = vmatprep.mubr.f32.mxu0 %v2412_v0  ;;  %1962 = vmatmul.mubr.msk.f32.gmra.mrb[32].mxu1 %vm400_vm0, %v1184_v37 }
 0x20d   : > { %1378 = vmatprep.mubr.f32.mxu1 %v2412_v0 }
 0x20e   : > { %v644_v38 = vpop.trf.xlu0 }
 0x20f   : > { %1947 = vmatmul.mubr.msk.f32.gmra.mrb[34].mxu0 %vm400_vm0, %v644_v38  ;;  %v1185_v40 = vpop.trf.xlu1 }
 0x210   : > { %843 = vmatprep.mubr.f32.mxu0 %v2412_v0  ;;  %1963 = vmatmul.mubr.msk.f32.gmra.mrb[34].mxu1 %vm400_vm0, %v1185_v40 }
 0x211   : > { %1384 = vmatprep.mubr.f32.mxu1 %v2412_v0 }
 0x212   : > { %v645_v41 = vpop.trf.xlu0 }
 0x213   : > { %1948 = vmatmul.mubr.msk.f32.gmra.mrb[36].mxu0 %vm400_vm0, %v645_v41  ;;  %v1186_v43 = vpop.trf.xlu1 }
 0x214   : > { %849 = vmatprep.mubr.f32.mxu0 %v2412_v0  ;;  %1964 = vmatmul.mubr.msk.f32.gmra.mrb[36].mxu1 %vm400_vm0, %v1186_v43 }
 0x215   : > { %1390 = vmatprep.mubr.f32.mxu1 %v2412_v0 }
 0x216   : > { %v646_v44 = vpop.trf.xlu0 }
 0x217   : > { %1949 = vmatmul.mubr.msk.f32.gmra.mrb[38].mxu0 %vm400_vm0, %v646_v44  ;;  %v1187_v45 = vpop.trf.xlu1 }
 0x218   : > { %1965 = vmatmul.mubr.msk.f32.gmra.mrb[38].mxu1 %vm400_vm0, %v1187_v45 }
 0x2ae   : > { %v2781_v46 = vpop.f32.mrb[8].mxu0 }
 0x2af   : > { %v2783_v47 = vpop.f32.mrb[9].mxu0  ;;  %v2785_v49 = vpop.f32.mrb[8].mxu1 }
 0x2b0   : > { %v2787_v50 = vpop.f32.mrb[9].mxu1  ;;  %v856_v51 = vmax.f32 %v2781_v46, %v2783_v47 }
 0x2b1   : > { %v1397_v0 = vmax.f32 %v2785_v49, %v2787_v50 }
 0x2b2   : > { %857 = vmax.xlane.f32.xlu0 %v856_v51  ;;  %v2793_v53 = vpop.f32.mrb[10].mxu0 }
 0x2b3   : > { %1398 = vmax.xlane.f32.xlu1 %v1397_v0  ;;  %v2795_v54 = vpop.f32.mrb[11].mxu0  ;;  %v2797_v55 = vpop.f32.mrb[10].mxu1 }
 0x2b4   : > { %v2799_v56 = vpop.f32.mrb[11].mxu1  ;;  %v859_v58 = vmax.f32 %v2793_v53, %v2795_v54 }
 0x2b5   : > { %v1400_v59 = vmax.f32 %v2797_v55, %v2799_v56 }
 0x2b6   : > { %v2805_v61 = vpop.f32.mrb[12].mxu0 }
 0x2b7   : > { %860 = vmax.xlane.f32.xlu1 %v859_v58  ;;  %v2807_v62 = vpop.f32.mrb[13].mxu0  ;;  %v2809_v63 = vpop.f32.mrb[12].mxu1 }
 0x2b8   : > { %v862_v1 = vmax.f32 %v2805_v61, %v2807_v62  ;;  %v2813_v2 = vpop.f32.mrb[13].mxu1 }
 0x2b9   : > { %v1403_v4 = vmax.f32 %v2809_v63, %v2813_v2 }
 0x2ba   : > { %863 = vmax.xlane.f32.xlu0 %v862_v1  ;;  %v2817_v5 = vpop.f32.mrb[14].mxu0 }
 0x2bb   : > { %1401 = vmax.xlane.f32.xlu1 %v1400_v59  ;;  %v2819_v7 = vpop.f32.mrb[15].mxu0  ;;  %v2821_v9 = vpop.f32.mrb[14].mxu1 }
 0x2bc   : > { %v865_v11 = vmax.f32 %v2817_v5, %v2819_v7  ;;  %v2825_v12 = vpop.f32.mrb[15].mxu1 }
 0x2bd   : > { %v1406_v13 = vmax.f32 %v2821_v9, %v2825_v12 }
 0x2be   : > { %866 = vmax.xlane.f32.xlu0 %v865_v11  ;;  %v2829_v14 = vpop.f32.mrb[16].mxu0 }
 0x2bf   : > { %1404 = vmax.xlane.f32.xlu1 %v1403_v4  ;;  %v2831_v15 = vpop.f32.mrb[17].mxu0  ;;  %v2833_v17 = vpop.f32.mrb[16].mxu1 }
 0x2c0   : > { %v868_v18 = vmax.f32 %v2829_v14, %v2831_v15  ;;  %v2837_v19 = vpop.f32.mrb[17].mxu1 }
 0x2c1   : > { %v1409_v20 = vmax.f32 %v2833_v17, %v2837_v19 }
 0x2c2   : > { %869 = vmax.xlane.f32.xlu0 %v868_v18  ;;  %v2841_v21 = vpop.f32.mrb[18].mxu0 }
 0x2c3   : > { %1407 = vmax.xlane.f32.xlu1 %v1406_v13  ;;  %v2843_v22 = vpop.f32.mrb[19].mxu0  ;;  %v2845_v23 = vpop.f32.mrb[18].mxu1 }
 0x2c4   : > { %v871_v24 = vmax.f32 %v2841_v21, %v2843_v22  ;;  %v2849_v25 = vpop.f32.mrb[19].mxu1 }
 0x2c5   : > { %v1412_v26 = vmax.f32 %v2845_v23, %v2849_v25 }
 0x2c6   : > { %872 = vmax.xlane.f32.xlu0 %v871_v24  ;;  %v2853_v27 = vpop.f32.mrb[20].mxu0 }
 0x2c7   : > { %1410 = vmax.xlane.f32.xlu1 %v1409_v20  ;;  %v2855_v28 = vpop.f32.mrb[21].mxu0  ;;  %v2857_v29 = vpop.f32.mrb[20].mxu1 }
 0x2c8   : > { %v874_v30 = vmax.f32 %v2853_v27, %v2855_v28  ;;  %v2861_v31 = vpop.f32.mrb[21].mxu1 }
 0x2c9   : > { %v1415_v32 = vmax.f32 %v2857_v29, %v2861_v31 }
 0x2ca   : > { %875 = vmax.xlane.f32.xlu0 %v874_v30  ;;  %v2865_v33 = vpop.f32.mrb[22].mxu0 }
 0x2cb   : > { %1413 = vmax.xlane.f32.xlu1 %v1412_v26  ;;  %v2867_v34 = vpop.f32.mrb[23].mxu0  ;;  %v2869_v35 = vpop.f32.mrb[22].mxu1 }
 0x2cc   : > { %v877_v36 = vmax.f32 %v2865_v33, %v2867_v34  ;;  %v2873_v37 = vpop.f32.mrb[23].mxu1 }
 0x2cd   : > { %v1418_v38 = vmax.f32 %v2869_v35, %v2873_v37 }
 0x2ce   : > { %878 = vmax.xlane.f32.xlu0 %v877_v36  ;;  %v2877_v40 = vpop.f32.mrb[24].mxu0 }
 0x2cf   : > { %1416 = vmax.xlane.f32.xlu1 %v1415_v32  ;;  %v2879_v41 = vpop.f32.mrb[25].mxu0  ;;  %v2881_v43 = vpop.f32.mrb[24].mxu1 }
 0x2d0   : > { %v880_v44 = vmax.f32 %v2877_v40, %v2879_v41  ;;  %v2885_v45 = vpop.f32.mrb[25].mxu1 }
 0x2d1   : > { %v1421_v51 = vmax.f32 %v2881_v43, %v2885_v45 }
 0x2d2   : > { %881 = vmax.xlane.f32.xlu0 %v880_v44  ;;  %v2889_v0 = vpop.f32.mrb[26].mxu0 }
 0x2d3   : > { %1419 = vmax.xlane.f32.xlu1 %v1418_v38  ;;  %v2891_v58 = vpop.f32.mrb[27].mxu0  ;;  %v2893_v59 = vpop.f32.mrb[26].mxu1 }
 0x2d4   : > { %v883_v1 = vmax.f32 %v2889_v0, %v2891_v58  ;;  %v2897_v4 = vpop.f32.mrb[27].mxu1 }
 0x2d5   : > { %v1424_v11 = vmax.f32 %v2893_v59, %v2897_v4 }
 0x2d6   : > { %884 = vmax.xlane.f32.xlu0 %v883_v1  ;;  %v2901_v13 = vpop.f32.mrb[28].mxu0 }
 0x2d7   : > { %1422 = vmax.xlane.f32.xlu1 %v1421_v51  ;;  %v2903_v18 = vpop.f32.mrb[29].mxu0  ;;  %v2905_v20 = vpop.f32.mrb[28].mxu1 }
 0x2d8   : > { %v886_v24 = vmax.f32 %v2901_v13, %v2903_v18  ;;  %v2909_v26 = vpop.f32.mrb[29].mxu1 }
 0x2d9   : > { %v1427_v30 = vmax.f32 %v2905_v20, %v2909_v26 }
 0x2da   : > { %887 = vmax.xlane.f32.xlu0 %v886_v24  ;;  %v2913_v32 = vpop.f32.mrb[30].mxu0 }
 0x2db   : > { %1425 = vmax.xlane.f32.xlu1 %v1424_v11  ;;  %v2915_v36 = vpop.f32.mrb[31].mxu0  ;;  %v2917_v38 = vpop.f32.mrb[30].mxu1 }
 0x2dc   : > { %3432 = vst [vmem:[#allocation21_spill] sm:$0xff] %v2917_v38  ;;  %v889_v44 = vmax.f32 %v2913_v32, %v2915_v36  ;;  %v2921_v51 = vpop.f32.mrb[31].mxu1 }
 0x2dd   : > { %3433 = vst [vmem:[#allocation22_spill] sm:$0xff] %v2921_v51  ;;  %v1430_v1 = vmax.f32 %v2917_v38, %v2921_v51 }
 0x2de   : > { %890 = vmax.xlane.f32.xlu0 %v889_v44  ;;  %v2925_v8 = vpop.f32.mrb[32].mxu0 }
 0x2df   : > { %1428 = vmax.xlane.f32.xlu1 %v1427_v30  ;;  %v2927_v24 = vpop.f32.mrb[33].mxu0  ;;  %v2929_v3 = vpop.f32.mrb[32].mxu1 }
 0x2e0   : > { %3434 = vst [vmem:[#allocation23_spill] sm:$0xff] %v2929_v3  ;;  %v892_v11 = vmax.f32 %v2925_v8, %v2927_v24  ;;  %v2933_v60 = vpop.f32.mrb[33].mxu1 }
 0x2e1   : > { %3435 = vst [vmem:[#allocation24_spill] sm:$0xff] %v2933_v60  ;;  %v1433_v57 = vmax.f32 %v2929_v3, %v2933_v60 }
 0x2e2   : > { %893 = vmax.xlane.f32.xlu0 %v892_v11  ;;  %v2937_v42 = vpop.f32.mrb[34].mxu0 }
 0x2e3   : > { %3436 = vst [vmem:[#allocation25_spill] sm:$0xff] %v2937_v42  ;;  %1431 = vmax.xlane.f32.xlu1 %v1430_v1  ;;  %v2939_v44 = vpop.f32.mrb[35].mxu0  ;;  %v2941_v39 = vpop.f32.mrb[34].mxu1 }
 0x2e4   : > { %3437 = vst [vmem:[#allocation26_spill] sm:$0xff] %v2939_v44  ;;  %3438 = vst [vmem:[#allocation27_spill] sm:$0xff] %v2941_v39  ;;  %v895_v30 = vmax.f32 %v2937_v42, %v2939_v44  ;;  %v2945_v52 = vpop.f32.mrb[35].mxu1 }
 0x2e5   : > { %3439 = vst [vmem:[#allocation28_spill] sm:$0xff] %v2945_v52  ;;  %v1436_v48 = vmax.f32 %v2941_v39, %v2945_v52 }
 0x2e6   : > { %896 = vmax.xlane.f32.xlu0 %v895_v30  ;;  %v2949_v6 = vpop.f32.mrb[36].mxu0 }
 0x2e7   : > { %3440 = vst [vmem:[#allocation29_spill] sm:$0xff] %v2949_v6  ;;  %1434 = vmax.xlane.f32.xlu1 %v1433_v57  ;;  %v2951_v11 = vpop.f32.mrb[37].mxu0  ;;  %v2953_v10 = vpop.f32.mrb[36].mxu1 }
 0x2e8   : > { %3441 = vst [vmem:[#allocation30_spill] sm:$0xff] %v2951_v11  ;;  %3442 = vst [vmem:[#allocation31_spill] sm:$0xff] %v2953_v10  ;;  %v898_v1 = vmax.f32 %v2949_v6, %v2951_v11  ;;  %v2957_v16 = vpop.f32.mrb[37].mxu1 }
 0x2e9   : > { %3443 = vst [vmem:[#allocation32_spill] sm:$0xff] %v2957_v16  ;;  %v1439_v60 = vmax.f32 %v2953_v10, %v2957_v16 }
 0x2ea   : > { %899 = vmax.xlane.f32.xlu0 %v898_v1  ;;  %v2961_v3 = vpop.f32.mrb[38].mxu0 }
 0x2eb   : > { %3444 = vst [vmem:[#allocation33_spill] sm:$0xff] %v2961_v3  ;;  %1437 = vmax.xlane.f32.xlu1 %v1436_v48  ;;  %v2963_v30 = vpop.f32.mrb[39].mxu0  ;;  %v2965_v52 = vpop.f32.mrb[38].mxu1 }
 0x2ec   : > { %3445 = vst [vmem:[#allocation34_spill] sm:$0xff] %v2963_v30  ;;  %v901_v57 = vmax.f32 %v2961_v3, %v2963_v30  ;;  %v2969_v39 = vpop.f32.mrb[39].mxu1 }
 0x2ed   : > { %v1442_v11 = vmax.f32 %v2965_v52, %v2969_v39 }
 0x2ee   : > { %902 = vmax.xlane.f32.xlu0 %v901_v57 }
 0x2ef   : > { %1440 = vmax.xlane.f32.xlu1 %v1439_v60 }
 0x2f3   : > { %1443 = vmax.xlane.f32.xlu1 %v1442_v11 }
 0x33f   : > { %v858_v16 = vpop.xlane.xlu0 %857 }
 0x340   : > { %v904_v1 = vsub.f32 %v2781_v46, %v858_v16  ;;  %v905_v48 = vsub.f32 %v2783_v47, %v858_v16  ;;  %v1399_v10 = vpop.xlane.xlu1 %1398 }
 0x341   : > { %v1445_v6 = vsub.f32 %v2785_v49, %v1399_v10  ;;  %v1446_v44 = vsub.f32 %v2787_v50, %v1399_v10 }
 0x342   : > { %v936_v42 = vmul.f32 1.442695, %v904_v1  ;;  %v938_v30 = vmul.f32 1.442695, %v905_v48 }
 0x343   : > { %v1477_v3 = vmul.f32 1.442695, %v1445_v6  ;;  %v1479_v51 = vmul.f32 1.442695, %v1446_v44 }
 0x344   : > { %2063 = vpow2.f32 %v936_v42  ;;  %v861_v38 = vpop.xlane.xlu1 %860 }
 0x345   : > { %2065 = vpow2.f32 %v938_v30  ;;  %v906_v60 = vsub.f32 %v2793_v53, %v861_v38  ;;  %v907_v11 = vsub.f32 %v2795_v54, %v861_v38 }
 0x346   : > { %2067 = vpow2.f32 %v1477_v3 }
 0x347   : > { %2069 = vpow2.f32 %v1479_v51  ;;  %v940_v46 = vmul.f32 1.442695, %v906_v60  ;;  %v942_v16 = vmul.f32 1.442695, %v907_v11  ;;  %v864_v47 = vpop.xlane.xlu0 %863 }
 0x348   : > { %v908_v49 = vsub.f32 %v2805_v61, %v864_v47  ;;  %v909_v10 = vsub.f32 %v2807_v62, %v864_v47  ;;  %v1402_v50 = vpop.xlane.xlu1 %1401 }
 0x349   : > { %2071 = vpow2.f32 %v940_v46  ;;  %v1447_v6 = vsub.f32 %v2797_v55, %v1402_v50  ;;  %v1448_v42 = vsub.f32 %v2799_v56, %v1402_v50 }
 0x34a   : > { %2073 = vpow2.f32 %v942_v16  ;;  %v944_v44 = vmul.f32 1.442695, %v908_v49  ;;  %v946_v53 = vmul.f32 1.442695, %v909_v10 }
 0x34b   : > { %v1481_v30 = vmul.f32 1.442695, %v1447_v6  ;;  %v1483_v54 = vmul.f32 1.442695, %v1448_v42  ;;  %v867_v3 = vpop.xlane.xlu0 %866 }
 0x34c   : > { %2075 = vpow2.f32 %v944_v44  ;;  %v910_v38 = vsub.f32 %v2817_v5, %v867_v3  ;;  %v911_v51 = vsub.f32 %v2819_v7, %v867_v3  ;;  %v1405_v61 = vpop.xlane.xlu1 %1404 }
 0x34d   : > { %2077 = vpow2.f32 %v946_v53  ;;  %v1449_v62 = vsub.f32 %v2809_v63, %v1405_v61  ;;  %v1450_v57 = vsub.f32 %v2813_v2, %v1405_v61 }
 0x34e   : > { %v2987_v55 = vpop.eup %2063  ;;  %2079 = vpow2.f32 %v1481_v30  ;;  %v948_v56 = vmul.f32 1.442695, %v910_v38  ;;  %v950_v1 = vmul.f32 1.442695, %v911_v51 }
 0x34f   : > { %v2989_v48 = vpop.eup %2065  ;;  %2081 = vpow2.f32 %v1483_v54  ;;  %v1485_v60 = vmul.f32 1.442695, %v1449_v62  ;;  %v1487_v11 = vmul.f32 1.442695, %v1450_v57  ;;  %v870_v46 = vpop.xlane.xlu0 %869 }
 0x350   : > { %v2991_v5 = vpop.eup %2067  ;;  %2083 = vpow2.f32 %v948_v56  ;;  %v912_v7 = vsub.f32 %v2829_v14, %v870_v46  ;;  %v913_v63 = vsub.f32 %v2831_v15, %v870_v46  ;;  %v1408_v16 = vpop.xlane.xlu1 %1407  ;;  %v1000_v2 = vadd.f32 %v2989_v48, %v2987_v55 }
 0x351   : > { %v2997_v47 = vpop.eup %2069  ;;  %2085 = vpow2.f32 %v950_v1  ;;  %v1451_v49 = vsub.f32 %v2821_v9, %v1408_v16  ;;  %v1452_v10 = vsub.f32 %v2825_v12, %v1408_v16 }
 0x352   : > { %2087 = vpow2.f32 %v1485_v60  ;;  %v952_v50 = vmul.f32 1.442695, %v912_v7  ;;  %v954_v6 = vmul.f32 1.442695, %v913_v63  ;;  %1001 = vadd.xlane.f32.xlu0 %v1000_v2  ;;  %v1541_v12 = vadd.f32 %v2997_v47, %v2991_v5 }
 0x353   : > { %v3001_v42 = vpop.eup %2071  ;;  %2089 = vpow2.f32 %v1487_v11  ;;  %v1489_v14 = vmul.f32 1.442695, %v1451_v49  ;;  %v1491_v15 = vmul.f32 1.442695, %v1452_v10  ;;  %v873_v44 = vpop.xlane.xlu0 %872 }
 0x354   : > { %v3003_v53 = vpop.eup %2073  ;;  %2091 = vpow2.f32 %v952_v50  ;;  %v914_v30 = vsub.f32 %v2841_v21, %v873_v44  ;;  %v915_v54 = vsub.f32 %v2843_v22, %v873_v44  ;;  %v1411_v9 = vpop.xlane.xlu1 %1410 }
 0x355   : > { %2093 = vpow2.f32 %v954_v6  ;;  %v1453_v3 = vsub.f32 %v2833_v17, %v1411_v9  ;;  %v1454_v38 = vsub.f32 %v2837_v19, %v1411_v9  ;;  %v1003_v51 = vadd.f32 %v3003_v53, %v3001_v42 }
 0x356   : > { %v3013_v61 = vpop.eup %2075  ;;  %2095 = vpow2.f32 %v1489_v14  ;;  %v956_v62 = vmul.f32 1.442695, %v914_v30  ;;  %v958_v57 = vmul.f32 1.442695, %v915_v54  ;;  %1542 = vadd.xlane.f32.xlu0 %v1541_v12 }
 0x357   : > { %v3015_v21 = vpop.eup %2077  ;;  %2097 = vpow2.f32 %v1491_v15  ;;  %v1493_v22 = vmul.f32 1.442695, %v1453_v3  ;;  %v1495_v56 = vmul.f32 1.442695, %v1454_v38  ;;  %1004 = vadd.xlane.f32.xlu1 %v1003_v51  ;;  %v876_v1 = vpop.xlane.xlu0 %875 }
 0x358   : > { %v3017_v60 = vpop.eup %2079  ;;  %2099 = vpow2.f32 %v956_v62  ;;  %v916_v17 = vsub.f32 %v2853_v27, %v876_v1  ;;  %v917_v19 = vsub.f32 %v2855_v28, %v876_v1  ;;  %v1414_v11 = vpop.xlane.xlu1 %1413  ;;  %v1006_v46 = vadd.f32 %v3015_v21, %v3013_v61 }
 0x359   : > { %v3023_v7 = vpop.eup %2081  ;;  %2101 = vpow2.f32 %v958_v57  ;;  %v1455_v63 = vsub.f32 %v2845_v23, %v1414_v11  ;;  %v1456_v16 = vsub.f32 %v2849_v25, %v1414_v11 }
 0x35a   : > { %v3027_v2 = vpop.eup %2083  ;;  %2103 = vpow2.f32 %v1493_v22  ;;  %v960_v49 = vmul.f32 1.442695, %v916_v17  ;;  %v962_v10 = vmul.f32 1.442695, %v917_v19  ;;  %1007 = vadd.xlane.f32.xlu0 %v1006_v46  ;;  %v1544_v27 = vadd.f32 %v3023_v7, %v3017_v60 }
 0x35b   : > { %v3031_v28 = vpop.eup %2085  ;;  %2105 = vpow2.f32 %v1495_v56  ;;  %v1497_v50 = vmul.f32 1.442695, %v1455_v63  ;;  %v1499_v6 = vmul.f32 1.442695, %v1456_v16  ;;  %v879_v14 = vpop.xlane.xlu0 %878 }
 0x35c   : > { %v3033_v15 = vpop.eup %2087  ;;  %2107 = vpow2.f32 %v960_v49  ;;  %1545 = vadd.xlane.f32.xlu1 %v1544_v27  ;;  %v918_v23 = vsub.f32 %v2865_v33, %v879_v14  ;;  %v919_v25 = vsub.f32 %v2867_v34, %v879_v14  ;;  %v1417_v44 = vpop.xlane.xlu1 %1416  ;;  %v1009_v30 = vadd.f32 %v3031_v28, %v3027_v2 }
 0x35d   : > { %v3039_v54 = vpop.eup %2089  ;;  %2109 = vpow2.f32 %v962_v10  ;;  %v1457_v9 = vsub.f32 %v2857_v29, %v1417_v44  ;;  %v1458_v12 = vsub.f32 %v2861_v31, %v1417_v44 }
 0x35e   : > { %v3043_v3 = vpop.eup %2091  ;;  %2111 = vpow2.f32 %v1497_v50  ;;  %v964_v38 = vmul.f32 1.442695, %v918_v23  ;;  %v966_v51 = vmul.f32 1.442695, %v919_v25  ;;  %1010 = vadd.xlane.f32.xlu0 %v1009_v30  ;;  %v1547_v33 = vadd.f32 %v3039_v54, %v3033_v15 }
 0x35f   : > { %v3047_v34 = vpop.eup %2093  ;;  %2113 = vpow2.f32 %v1499_v6  ;;  %v1501_v62 = vmul.f32 1.442695, %v1457_v9  ;;  %v1503_v57 = vmul.f32 1.442695, %v1458_v12  ;;  %v882_v22 = vpop.xlane.xlu0 %881 }
 0x360   : > { %v3049_v56 = vpop.eup %2095  ;;  %2115 = vpow2.f32 %v964_v38  ;;  %1548 = vadd.xlane.f32.xlu1 %v1547_v33  ;;  %v920_v29 = vsub.f32 %v2877_v40, %v882_v22  ;;  %v921_v31 = vsub.f32 %v2879_v41, %v882_v22  ;;  %v1420_v1 = vpop.xlane.xlu1 %1419  ;;  %v1012_v17 = vadd.f32 %v3047_v34, %v3043_v3 }
 0x361   : > { %v3055_v19 = vpop.eup %2097  ;;  %2117 = vpow2.f32 %v966_v51  ;;  %v1459_v11 = vsub.f32 %v2869_v35, %v1420_v1  ;;  %v1460_v46 = vsub.f32 %v2873_v37, %v1420_v1 }
 0x362   : > { %v3059_v63 = vpop.eup %2099  ;;  %2119 = vpow2.f32 %v1501_v62  ;;  %v968_v16 = vmul.f32 1.442695, %v920_v29  ;;  %v970_v49 = vmul.f32 1.442695, %v921_v31  ;;  %1013 = vadd.xlane.f32.xlu0 %v1012_v17  ;;  %v1550_v40 = vadd.f32 %v3055_v19, %v3049_v56 }
 0x363   : > { %v3063_v41 = vpop.eup %2101  ;;  %2121 = vpow2.f32 %v1503_v57  ;;  %v1505_v10 = vmul.f32 1.442695, %v1459_v11  ;;  %v1507_v27 = vmul.f32 1.442695, %v1460_v46  ;;  %v885_v50 = vpop.xlane.xlu0 %884 }
 0x364   : > { %v3065_v6 = vpop.eup %2103  ;;  %2123 = vpow2.f32 %v968_v16  ;;  %1551 = vadd.xlane.f32.xlu1 %v1550_v40  ;;  %v922_v35 = vsub.f32 %v2889_v0, %v885_v50  ;;  %v923_v37 = vsub.f32 %v2891_v58, %v885_v50  ;;  %v1423_v14 = vpop.xlane.xlu1 %1422  ;;  %v1015_v23 = vadd.f32 %v3063_v41, %v3059_v63 }
 0x365   : > { %v3071_v25 = vpop.eup %2105  ;;  %2125 = vpow2.f32 %v970_v49  ;;  %v1461_v44 = vsub.f32 %v2881_v43, %v1423_v14  ;;  %v1462_v30 = vsub.f32 %v2885_v45, %v1423_v14 }
 0x366   : > { %v3075_v9 = vpop.eup %2107  ;;  %2127 = vpow2.f32 %v1505_v10  ;;  %v972_v12 = vmul.f32 1.442695, %v922_v35  ;;  %v974_v38 = vmul.f32 1.442695, %v923_v37  ;;  %1016 = vadd.xlane.f32.xlu0 %v1015_v23  ;;  %v1553_v0 = vadd.f32 %v3071_v25, %v3065_v6 }
 0x367   : > { %v3079_v58 = vpop.eup %2109  ;;  %2129 = vpow2.f32 %v1507_v27  ;;  %v1509_v51 = vmul.f32 1.442695, %v1461_v44  ;;  %v1511_v33 = vmul.f32 1.442695, %v1462_v30  ;;  %v888_v62 = vpop.xlane.xlu0 %887 }
 0x368   : > { %v3081_v57 = vpop.eup %2111  ;;  %2131 = vpow2.f32 %v972_v12  ;;  %1554 = vadd.xlane.f32.xlu1 %v1553_v0  ;;  %v924_v43 = vsub.f32 %v2901_v13, %v888_v62  ;;  %v925_v45 = vsub.f32 %v2903_v18, %v888_v62  ;;  %v1426_v22 = vpop.xlane.xlu1 %1425  ;;  %v1018_v29 = vadd.f32 %v3079_v58, %v3075_v9 }
 0x369   : > { %v3087_v31 = vpop.eup %2113  ;;  %2133 = vpow2.f32 %v974_v38  ;;  %v1463_v1 = vsub.f32 %v2893_v59, %v1426_v22  ;;  %v1464_v17 = vsub.f32 %v2897_v4, %v1426_v22  ;;  %v3446_v22 = vld [vmem:[#allocation21_spill] sm:$0xff] }
 0x36a   : > { %v3091_v11 = vpop.eup %2115  ;;  %2135 = vpow2.f32 %v1509_v51  ;;  %v976_v46 = vmul.f32 1.442695, %v924_v43  ;;  %v978_v16 = vmul.f32 1.442695, %v925_v45  ;;  %1019 = vadd.xlane.f32.xlu0 %v1018_v29  ;;  %v1556_v13 = vadd.f32 %v3087_v31, %v3081_v57 }
 0x36b   : > { %v3095_v18 = vpop.eup %2117  ;;  %2137 = vpow2.f32 %v1511_v33  ;;  %v1513_v49 = vmul.f32 1.442695, %v1463_v1  ;;  %v1515_v40 = vmul.f32 1.442695, %v1464_v17  ;;  %v891_v10 = vpop.xlane.xlu0 %890  ;;  %v3447_v1 = vld [vmem:[#allocation22_spill] sm:$0xff] }
 0x36c   : > { %v3097_v27 = vpop.eup %2119  ;;  %2139 = vpow2.f32 %v976_v46  ;;  %1557 = vadd.xlane.f32.xlu1 %v1556_v13  ;;  %v926_v59 = vsub.f32 %v2913_v32, %v891_v10  ;;  %v927_v4 = vsub.f32 %v2915_v36, %v891_v10  ;;  %v1429_v50 = vpop.xlane.xlu1 %1428  ;;  %v1021_v35 = vadd.f32 %v3095_v18, %v3091_v11 }
 0x36d   : > { %v3103_v37 = vpop.eup %2121  ;;  %2141 = vpow2.f32 %v978_v16  ;;  %v1465_v14 = vsub.f32 %v2905_v20, %v1429_v50  ;;  %v1466_v23 = vsub.f32 %v2909_v26, %v1429_v50 }
 0x36e   : > { %v3107_v44 = vpop.eup %2123  ;;  %2143 = vpow2.f32 %v1513_v49  ;;  %v980_v30 = vmul.f32 1.442695, %v926_v59  ;;  %v982_v12 = vmul.f32 1.442695, %v927_v4  ;;  %1022 = vadd.xlane.f32.xlu0 %v1021_v35  ;;  %v1559_v32 = vadd.f32 %v3103_v37, %v3097_v27  ;;  %v3448_v4 = vld [vmem:[#allocation25_spill] sm:$0xff]  ;;  %v3449_v35 = vld [vmem:[#allocation26_spill] sm:$0xff] }
 0x36f   : > { %v3111_v36 = vpop.eup %2125  ;;  %2145 = vpow2.f32 %v1515_v40  ;;  %v1517_v38 = vmul.f32 1.442695, %v1465_v14  ;;  %v1519_v0 = vmul.f32 1.442695, %v1466_v23  ;;  %v894_v51 = vpop.xlane.xlu0 %893 }
 0x370   : > { %v3113_v33 = vpop.eup %2127  ;;  %2147 = vpow2.f32 %v980_v30  ;;  %1560 = vadd.xlane.f32.xlu1 %v1559_v32  ;;  %v928_v20 = vsub.f32 %v2925_v8, %v894_v51  ;;  %v929_v26 = vsub.f32 %v2927_v24, %v894_v51  ;;  %v1432_v62 = vpop.xlane.xlu1 %1431  ;;  %v1024_v43 = vadd.f32 %v3111_v36, %v3107_v44  ;;  %v3450_v32 = vld [vmem:[#allocation23_spill] sm:$0xff] }
 0x371   : > { %v3119_v45 = vpop.eup %2129  ;;  %2149 = vpow2.f32 %v982_v12  ;;  %v1467_v29 = vsub.f32 %v3446_v22, %v1432_v62  ;;  %v1468_v17 = vsub.f32 %v3447_v1, %v1432_v62 }
 0x372   : > { %v3123_v46 = vpop.eup %2131  ;;  %2151 = vpow2.f32 %v1517_v38  ;;  %v984_v16 = vmul.f32 1.442695, %v928_v20  ;;  %v986_v13 = vmul.f32 1.442695, %v929_v26  ;;  %1025 = vadd.xlane.f32.xlu0 %v1024_v43  ;;  %v1562_v8 = vadd.f32 %v3119_v45, %v3113_v33 }
 0x373   : > { %v3127_v24 = vpop.eup %2133  ;;  %2153 = vpow2.f32 %v1519_v0  ;;  %v1521_v49 = vmul.f32 1.442695, %v1467_v29  ;;  %v1523_v40 = vmul.f32 1.442695, %v1468_v17  ;;  %v897_v10 = vpop.xlane.xlu0 %896  ;;  %v3451_v0 = vld [vmem:[#allocation24_spill] sm:$0xff] }
 0x374   : > { %v3129_v59 = vpop.eup %2135  ;;  %2155 = vpow2.f32 %v984_v16  ;;  %1563 = vadd.xlane.f32.xlu1 %v1562_v8  ;;  %v930_v50 = vsub.f32 %v3448_v4, %v897_v10  ;;  %v931_v14 = vsub.f32 %v3449_v35, %v897_v10  ;;  %v1435_v23 = vpop.xlane.xlu1 %1434  ;;  %v1027_v30 = vadd.f32 %v3127_v24, %v3123_v46  ;;  %v3454_v10 = vld [vmem:[#allocation30_spill] sm:$0xff] }
 0x375   : > { %v3135_v12 = vpop.eup %2137  ;;  %2157 = vpow2.f32 %v986_v13  ;;  %v1469_v38 = vsub.f32 %v3450_v32, %v1435_v23  ;;  %v1470_v51 = vsub.f32 %v3451_v0, %v1435_v23  ;;  %v3453_v13 = vld [vmem:[#allocation29_spill] sm:$0xff]  ;;  %v3457_v23 = vld [vmem:[#allocation28_spill] sm:$0xff] }
 0x376   : > { %v3139_v20 = vpop.eup %2139  ;;  %2159 = vpow2.f32 %v1521_v49  ;;  %v988_v26 = vmul.f32 1.442695, %v930_v50  ;;  %v990_v62 = vmul.f32 1.442695, %v931_v14  ;;  %1028 = vadd.xlane.f32.xlu0 %v1027_v30  ;;  %v1565_v43 = vadd.f32 %v3135_v12, %v3129_v59  ;;  %v3456_v14 = vld [vmem:[#allocation27_spill] sm:$0xff] }
 0x377   : > { %v3143_v22 = vpop.eup %2141  ;;  %2161 = vpow2.f32 %v1523_v40  ;;  %v1525_v29 = vmul.f32 1.442695, %v1469_v38  ;;  %v1527_v1 = vmul.f32 1.442695, %v1470_v51  ;;  %v900_v17 = vpop.xlane.xlu0 %899 }
 0x378   : > { %v3145_v16 = vpop.eup %2143  ;;  %2163 = vpow2.f32 %v988_v26  ;;  %1566 = vadd.xlane.f32.xlu1 %v1565_v43  ;;  %v932_v8 = vsub.f32 %v3453_v13, %v900_v17  ;;  %v933_v49 = vsub.f32 %v3454_v10, %v900_v17  ;;  %v1438_v4 = vpop.xlane.xlu1 %1437  ;;  %v1030_v50 = vadd.f32 %v3143_v22, %v3139_v20  ;;  %v3461_v10 = vld [vmem:[#allocation33_spill] sm:$0xff] }
 0x379   : > { %3452 = vst [vmem:[#allocation21_spill] sm:$0xff] %v3145_v16  ;;  %v3151_v35 = vpop.eup %2145  ;;  %2165 = vpow2.f32 %v990_v62  ;;  %v1471_v40 = vsub.f32 %v3456_v14, %v1438_v4  ;;  %v1472_v30 = vsub.f32 %v3457_v23, %v1438_v4  ;;  %v3462_v14 = vld [vmem:[#allocation34_spill] sm:$0xff]  ;;  %v3464_v23 = vld [vmem:[#allocation31_spill] sm:$0xff] }
 0x37a   : > { %3455 = vst [vmem:[#allocation22_spill] sm:$0xff] %v3151_v35  ;;  %v3155_v32 = vpop.eup %2147  ;;  %2167 = vpow2.f32 %v1525_v29  ;;  %v992_v38 = vmul.f32 1.442695, %v932_v8  ;;  %v994_v0 = vmul.f32 1.442695, %v933_v49  ;;  %1031 = vadd.xlane.f32.xlu0 %v1030_v50  ;;  %v1568_v51 = vadd.f32 %v3151_v35, %v3145_v16 }
 0x37b   : > { %3458 = vst [vmem:[#allocation25_spill] sm:$0xff] %v3155_v32  ;;  %v3159_v26 = vpop.eup %2149  ;;  %2169 = vpow2.f32 %v1527_v1  ;;  %v1529_v43 = vmul.f32 1.442695, %v1471_v40  ;;  %v1531_v17 = vmul.f32 1.442695, %v1472_v30  ;;  %v903_v13 = vpop.xlane.xlu0 %902  ;;  %v3465_v40 = vld [vmem:[#allocation32_spill] sm:$0xff] }
 0x37c   : > { %3459 = vst [vmem:[#allocation26_spill] sm:$0xff] %v3159_v26  ;;  %v3161_v62 = vpop.eup %2151  ;;  %2171 = vpow2.f32 %v992_v38  ;;  %1569 = vadd.xlane.f32.xlu1 %v1568_v51  ;;  %v934_v4 = vsub.f32 %v3461_v10, %v903_v13  ;;  %v935_v29 = vsub.f32 %v3462_v14, %v903_v13  ;;  %v1441_v8 = vpop.xlane.xlu1 %1440  ;;  %v1033_v49 = vadd.f32 %v3159_v26, %v3155_v32 }
 0x37d   : > { %3460 = vst [vmem:[#allocation23_spill] sm:$0xff] %v3161_v62  ;;  %v3167_v50 = vpop.eup %2153  ;;  %2173 = vpow2.f32 %v994_v0  ;;  %v1473_v1 = vsub.f32 %v3464_v23, %v1441_v8  ;;  %v1474_v30 = vsub.f32 %v3465_v40, %v1441_v8 }
 0x37e   : > { %3463 = vst [vmem:[#allocation24_spill] sm:$0xff] %v3167_v50  ;;  %v3171_v35 = vpop.eup %2155  ;;  %2175 = vpow2.f32 %v1529_v43  ;;  %v996_v38 = vmul.f32 1.442695, %v934_v4  ;;  %v998_v51 = vmul.f32 1.442695, %v935_v29  ;;  %1034 = vadd.xlane.f32.xlu0 %v1033_v49  ;;  %v1571_v13 = vadd.f32 %v3167_v50, %v3161_v62 }
 0x37f   : > { %3466 = vst [vmem:[#allocation29_spill] sm:$0xff] %v3171_v35  ;;  %v3175_v10 = vpop.eup %2157  ;;  %2177 = vpow2.f32 %v1531_v17  ;;  %v1533_v14 = vmul.f32 1.442695, %v1473_v1  ;;  %v1535_v26 = vmul.f32 1.442695, %v1474_v30 }
 0x380   : > { %3467 = vst [vmem:[#allocation30_spill] sm:$0xff] %v3175_v10  ;;  %v3177_v32 = vpop.eup %2159  ;;  %2179 = vpow2.f32 %v996_v38  ;;  %1572 = vadd.xlane.f32.xlu1 %v1571_v13  ;;  %v1444_v0 = vpop.xlane.xlu1 %1443  ;;  %v1036_v8 = vadd.f32 %v3175_v10, %v3171_v35 }
 0x381   : > { %3468 = vst [vmem:[#allocation27_spill] sm:$0xff] %v3177_v32  ;;  %v3181_v43 = vpop.eup %2161  ;;  %2181 = vpow2.f32 %v998_v51  ;;  %v1475_v4 = vsub.f32 %v2965_v52, %v1444_v0  ;;  %v1476_v29 = vsub.f32 %v2969_v39, %v1444_v0 }
 0x382   : > { %3469 = vst [vmem:[#allocation28_spill] sm:$0xff] %v3181_v43  ;;  %v3185_v49 = vpop.eup %2163  ;;  %2183 = vpow2.f32 %v1533_v14  ;;  %1037 = vadd.xlane.f32.xlu0 %v1036_v8  ;;  %v1574_v17 = vadd.f32 %v3181_v43, %v3177_v32  ;;  %v2267_v43 = vld [vmem:[%s2622_s22] sm:$0xff] }
 0x383   : > { %3470 = vst [vmem:[#allocation33_spill] sm:$0xff] %v3185_v49  ;;  %v3189_v23 = vpop.eup %2165  ;;  %2185 = vpow2.f32 %v1535_v26  ;;  %v1537_v1 = vmul.f32 1.442695, %v1475_v4  ;;  %v1539_v40 = vmul.f32 1.442695, %v1476_v29 }
 0x384   : > { %3471 = vst [vmem:[#allocation34_spill] sm:$0xff] %v3189_v23  ;;  %v3191_v30 = vpop.eup %2167  ;;  %1575 = vadd.xlane.f32.xlu1 %v1574_v17  ;;  %v1039_v52 = vadd.f32 %v3189_v23, %v3185_v49  ;;  %v3486_v23 = vld [vmem:[#allocation10_spill] sm:$0xff] }
 0x385   : > { %3472 = vst [vmem:[#allocation31_spill] sm:$0xff] %v3191_v30  ;;  %v3195_v38 = vpop.eup %2169  ;;  %2187 = vpow2.f32 %v1537_v1 }
 0x386   : > { %3473 = vst [vmem:[#allocation32_spill] sm:$0xff] %v3195_v38  ;;  %v3197_v39 = vpop.eup %2171  ;;  %2189 = vpow2.f32 %v1539_v40  ;;  %1040 = vadd.xlane.f32.xlu0 %v1039_v52  ;;  %v1577_v51 = vadd.f32 %v3195_v38, %v3191_v30  ;;  %v2264_v38 = vld [vmem:[%s2629_s0 + $0x20] sm:$0xff] }
 0x387   : > { %3474 = vst [vmem:[#allocation35_spill] sm:$0xff] %v3197_v39  ;;  %v3201_v13 = vpop.eup %2173 }
 0x388   : > { %3475 = vst [vmem:[#allocation36_spill] sm:$0xff] %v3201_v13  ;;  %v3203_v26 = vpop.eup %2175  ;;  %1578 = vadd.xlane.f32.xlu1 %v1577_v51  ;;  %v1042_v14 = vadd.f32 %v3201_v13, %v3197_v39  ;;  %v2265_v13 = vld [vmem:[%s2622_s22 + $0x28] sm:$0xff] }
 0x389   : > { %3476 = vst [vmem:[#allocation37_spill] sm:$0xff] %v3203_v26  ;;  %v3207_v0 = vpop.eup %2177 }
 0x38a   : > { %3477 = vst [vmem:[#allocation38_spill] sm:$0xff] %v3207_v0  ;;  %v3209_v8 = vpop.eup %2179  ;;  %1043 = vadd.xlane.f32.xlu0 %v1042_v14  ;;  %v1580_v4 = vadd.f32 %v3207_v0, %v3203_v26  ;;  %v3485_v26 = vld [vmem:[#allocation11_spill] sm:$0xff] }
 0x38b   : > { %3478 = vst [vmem:[#allocation39_spill] sm:$0xff] %v3209_v8  ;;  %v3213_v29 = vpop.eup %2181 }
 0x38c   : > { %3479 = vst [vmem:[#allocation40_spill] sm:$0xff] %v3213_v29  ;;  %v3215_v17 = vpop.eup %2183  ;;  %1581 = vadd.xlane.f32.xlu1 %v1580_v4  ;;  %v1045_v1 = vadd.f32 %v3213_v29, %v3209_v8  ;;  %v3484_v4 = vld [vmem:[#allocation12_spill] sm:$0xff] }
 0x38d   : > { %3480 = vst [vmem:[#allocation41_spill] sm:$0xff] %v3215_v17  ;;  %v3219_v40 = vpop.eup %2185  ;;  %v1736_v29 = vadd.f32 %v3485_v26, %v3484_v4  ;;  %v2263_v8 = vld [vmem:[%s2622_s22 + $0x20] sm:$0xff] }
 0x38e   : > { %3481 = vst [vmem:[#allocation42_spill] sm:$0xff] %v3219_v40  ;;  %1046 = vadd.xlane.f32.xlu0 %v1045_v1  ;;  %v1583_v52 = vadd.f32 %v3219_v40, %v3215_v17  ;;  %v1729_v30 = vadd.f32 %v2264_v38, %v2263_v8  ;;  %v2266_v1 = vld [vmem:[%s2629_s0 + $0x28] sm:$0xff]  ;;  %v2268_v40 = vld [vmem:[%s2629_s0] sm:$0xff] }
 0x38f   : > { %v3223_v51 = vpop.eup %2187  ;;  %v1730_v39 = vadd.f32 %v2266_v1, %v2265_v13  ;;  %v1725_v17 = vadd.f32 %v2268_v40, %v2267_v43 }
 0x390   : > { %3482 = vst [vmem:[#allocation43_spill] sm:$0xff] %v3223_v51  ;;  %v3225_v14 = vpop.eup %2189  ;;  %1584 = vadd.xlane.f32.xlu1 %v1583_v52 }
 0x391   : > { %3483 = vst [vmem:[#allocation44_spill] sm:$0xff] %v3225_v14  ;;  %v1586_v0 = vadd.f32 %v3225_v14, %v3223_v51  ;;  %v1739_v32 = vadd.f32 %v1730_v39, %v1729_v30  ;;  %v1733_v52 = vadd.f32 %v3486_v23, %v1725_v17 }
 0x393   : > { %1734 = vadd.xlane.f32.xlu0 %v1733_v52 }
 0x394   : > { %1587 = vadd.xlane.f32.xlu1 %v1586_v0 }
 0x398   : > { %1737 = vadd.xlane.f32.xlu1 %v1736_v29 }
 0x39c   : > { %1740 = vadd.xlane.f32.xlu1 %v1739_v32 }
 0x3df   : > { %v1002_v14 = vpop.xlane.xlu0 %1001 }
 0x3e3   : > { %v1543_v0 = vpop.xlane.xlu0 %1542 }
 0x3e4   : > { %v1005_v51 = vpop.xlane.xlu1 %1004 }
 0x3e5   : > { %2191 = vrcp.f32 %v1005_v51 }
 0x3e6   : > { %2193 = vrcp.f32 %v1002_v14 }
 0x3e7   : > { %v1008_v49 = vpop.xlane.xlu0 %1007 }
 0x3e8   : > { %2195 = vrcp.f32 %v1008_v49 }
 0x3e9   : > { %v1546_v26 = vpop.xlane.xlu1 %1545 }
 0x3ea   : > { %2197 = vrcp.f32 %v1546_v26 }
 0x3eb   : > { %v1011_v4 = vpop.xlane.xlu0 %1010  ;;  %2199 = vrcp.f32 %v1543_v0 }
 0x3ec   : > { %2201 = vrcp.f32 %v1011_v4 }
 0x3ed   : > { %v1549_v50 = vpop.xlane.xlu1 %1548 }
 0x3ee   : > { %2203 = vrcp.f32 %v1549_v50 }
 0x3ef   : > { %v1014_v38 = vpop.xlane.xlu0 %1013  ;;  %v2192_v39 = vpop.eup %2191 }
 0x3f0   : > { %2205 = vrcp.f32 %v1014_v38  ;;  %v2194_v17 = vpop.eup %2193  ;;  %v1082_v40 = vmul.f32 %v2192_v39, %v3001_v42  ;;  %v1083_v14 = vmul.f32 %v2192_v39, %v3003_v53 }
 0x3f1   : > { %v1552_v8 = vpop.xlane.xlu1 %1551  ;;  %v1080_v0 = vmul.f32 %v2194_v17, %v2987_v55  ;;  %v1081_v4 = vmul.f32 %v2194_v17, %v2989_v48 }
 0x3f2   : > { %2207 = vrcp.f32 %v1552_v8  ;;  %v2196_v52 = vpop.eup %2195 }
 0x3f3   : > { %v1017_v62 = vpop.xlane.xlu0 %1016  ;;  %v1112_v8 = vadd.f32 %v1082_v40, %v1080_v0  ;;  %v1133_v35 = vadd.f32 %v1083_v14, %v1081_v4  ;;  %v1085_v53 = vmul.f32 %v2196_v52, %v3015_v21 }
 0x3f4   : > { %2209 = vrcp.f32 %v1017_v62  ;;  %v2198_v49 = vpop.eup %2197  ;;  %v1084_v62 = vmul.f32 %v2196_v52, %v3013_v61 }
 0x3f5   : > { %v1555_v13 = vpop.xlane.xlu1 %1554  ;;  %v2200_v50 = vpop.eup %2199  ;;  %v1624_v48 = vmul.f32 %v2198_v49, %v3023_v7  ;;  %v1134_v40 = vadd.f32 %v1133_v35, %v1085_v53 }
 0x3f6   : > { %2211 = vrcp.f32 %v1555_v13  ;;  %v2202_v38 = vpop.eup %2201  ;;  %v1623_v13 = vmul.f32 %v2198_v49, %v3017_v60  ;;  %v1113_v17 = vadd.f32 %v1112_v8, %v1084_v62 }
 0x3f7   : > { %v1020_v1 = vpop.xlane.xlu0 %1019  ;;  %v1087_v61 = vmul.f32 %v2202_v38, %v3031_v28 }
 0x3f8   : > { %2213 = vrcp.f32 %v1020_v1  ;;  %v2204_v10 = vpop.eup %2203  ;;  %v1621_v1 = vmul.f32 %v2200_v50, %v2991_v5 }
 0x3f9   : > { %v1558_v43 = vpop.xlane.xlu1 %1557  ;;  %v1625_v21 = vmul.f32 %v2204_v10, %v3033_v15  ;;  %v1626_v5 = vmul.f32 %v2204_v10, %v3039_v54  ;;  %v1135_v15 = vadd.f32 %v1134_v40, %v1087_v61 }
 0x3fa   : > { %2215 = vrcp.f32 %v1558_v43  ;;  %v2206_v55 = vpop.eup %2205  ;;  %v1086_v43 = vmul.f32 %v2202_v38, %v3027_v2  ;;  %v1653_v52 = vadd.f32 %v1623_v13, %v1621_v1 }
 0x3fb   : > { %v1023_v23 = vpop.xlane.xlu0 %1022  ;;  %v1088_v7 = vmul.f32 %v2206_v55, %v3043_v3  ;;  %v1089_v2 = vmul.f32 %v2206_v55, %v3047_v34 }
 0x3fc   : > { %2217 = vrcp.f32 %v1023_v23  ;;  %v2208_v16 = vpop.eup %2207  ;;  %v1622_v23 = vmul.f32 %v2200_v50, %v2997_v47  ;;  %v1114_v49 = vadd.f32 %v1113_v17, %v1086_v43  ;;  %v1654_v0 = vadd.f32 %v1653_v52, %v1625_v21 }
 0x3fd   : > { %v1561_v32 = vpop.xlane.xlu1 %1560  ;;  %v1627_v28 = vmul.f32 %v2208_v16, %v3049_v56  ;;  %v1628_v35 = vmul.f32 %v2208_v16, %v3055_v19  ;;  %v1136_v50 = vadd.f32 %v1135_v15, %v1089_v2 }
 0x3fe   : > { %2219 = vrcp.f32 %v1561_v32  ;;  %v2210_v32 = vpop.eup %2209  ;;  %v1674_v14 = vadd.f32 %v1624_v48, %v1622_v23 }
 0x3ff   : > { %v1026_v30 = vpop.xlane.xlu0 %1025  ;;  %v1090_v54 = vmul.f32 %v2210_v32, %v3059_v63  ;;  %v1091_v34 = vmul.f32 %v2210_v32, %v3063_v41  ;;  %v1655_v4 = vadd.f32 %v1654_v0, %v1627_v28 }
 0x400   : > { %2221 = vrcp.f32 %v1026_v30  ;;  %v2212_v47 = vpop.eup %2211 }
 0x401   : > { %v1564_v29 = vpop.xlane.xlu1 %1563  ;;  %v1629_v38 = vmul.f32 %v2212_v47, %v3065_v6  ;;  %v1137_v1 = vadd.f32 %v1136_v50, %v1091_v34 }
 0x402   : > { %2223 = vrcp.f32 %v1564_v29  ;;  %v2214_v29 = vpop.eup %2213 }
 0x403   : > { %v1029_v51 = vpop.xlane.xlu0 %1028  ;;  %v1092_v19 = vmul.f32 %v2214_v29, %v3075_v9  ;;  %v1093_v63 = vmul.f32 %v2214_v29, %v3079_v58 }
 0x404   : > { %2225 = vrcp.f32 %v1029_v51  ;;  %v2216_v3 = vpop.eup %2215  ;;  %v1675_v51 = vadd.f32 %v1674_v14, %v1626_v5 }
 0x405   : > { %v1567_v26 = vpop.xlane.xlu1 %1566  ;;  %v1631_v41 = vmul.f32 %v2216_v3, %v3081_v57  ;;  %v1138_v17 = vadd.f32 %v1137_v1, %v1093_v63  ;;  %v3491_v63 = vld [vmem:[#allocation29_spill] sm:$0xff]  ;;  %v3493_v1 = vld [vmem:[#allocation23_spill] sm:$0xff] }
 0x406   : > { %2227 = vrcp.f32 %v1567_v26  ;;  %v2218_v56 = vpop.eup %2217  ;;  %v1115_v26 = vadd.f32 %v1114_v49, %v1088_v7  ;;  %v1676_v16 = vadd.f32 %v1675_v51, %v1628_v35 }
 0x407   : > { %v1032_v42 = vpop.xlane.xlu0 %1031  ;;  %v1094_v6 = vmul.f32 %v2218_v56, %v3091_v11  ;;  %v1095_v9 = vmul.f32 %v2218_v56, %v3095_v18  ;;  %v3488_v56 = vld [vmem:[#allocation25_spill] sm:$0xff] }
 0x408   : > { %2229 = vrcp.f32 %v1032_v42  ;;  %v2220_v62 = vpop.eup %2219  ;;  %v1630_v42 = vmul.f32 %v2212_v47, %v3071_v25  ;;  %v1116_v53 = vadd.f32 %v1115_v26, %v1090_v54  ;;  %v1656_v25 = vadd.f32 %v1655_v4, %v1629_v38  ;;  %v3489_v26 = vld [vmem:[#allocation26_spill] sm:$0xff] }
 0x409   : > { %v1570_v39 = vpop.xlane.xlu1 %1569  ;;  %v1633_v58 = vmul.f32 %v2220_v62, %v3097_v27  ;;  %v1634_v21 = vmul.f32 %v2220_v62, %v3103_v37  ;;  %v1139_v2 = vadd.f32 %v1138_v17, %v1095_v9 }
 0x40a   : > { %2231 = vrcp.f32 %v1570_v39  ;;  %v2222_v55 = vpop.eup %2221  ;;  %v1632_v39 = vmul.f32 %v2216_v3, %v3087_v31  ;;  %v1677_v23 = vadd.f32 %v1676_v16, %v1630_v42  ;;  %v1117_v57 = vadd.f32 %v1116_v53, %v1092_v19  ;;  %v3492_v53 = vld [vmem:[#allocation30_spill] sm:$0xff] }
 0x40b   : > { %v1035_v60 = vpop.xlane.xlu0 %1034  ;;  %v1657_v32 = vadd.f32 %v1656_v25, %v1631_v41  ;;  %v1096_v31 = vmul.f32 %v2222_v55, %v3107_v44  ;;  %v1097_v11 = vmul.f32 %v2222_v55, %v3111_v36 }
 0x40c   : > { %2233 = vrcp.f32 %v1035_v60  ;;  %v2224_v48 = vpop.eup %2223  ;;  %v1678_v18 = vadd.f32 %v1677_v23, %v1632_v39  ;;  %v1118_v5 = vadd.f32 %v1117_v57, %v1094_v6  ;;  %v3494_v6 = vld [vmem:[#allocation24_spill] sm:$0xff]  ;;  %v3496_v23 = vld [vmem:[#allocation34_spill] sm:$0xff] }
 0x40d   : > { %v1573_v30 = vpop.xlane.xlu1 %1572  ;;  %v1635_v27 = vmul.f32 %v2224_v48, %v3113_v33  ;;  %v1658_v28 = vadd.f32 %v1657_v32, %v1633_v58  ;;  %v1636_v36 = vmul.f32 %v2224_v48, %v3119_v45  ;;  %v1140_v29 = vadd.f32 %v1139_v2, %v1097_v11  ;;  %v3497_v32 = vld [vmem:[#allocation27_spill] sm:$0xff]  ;;  %v3498_v11 = vld [vmem:[#allocation28_spill] sm:$0xff] }
 0x40e   : > { %v2226_v61 = vpop.eup %2225  ;;  %v1679_v44 = vadd.f32 %v1678_v18, %v1634_v21  ;;  %v1119_v15 = vadd.f32 %v1118_v5, %v1096_v31  ;;  %v3499_v5 = vld [vmem:[#allocation35_spill] sm:$0xff] }
 0x40f   : > { %v1038_v10 = vpop.xlane.xlu0 %1037  ;;  %v1099_v37 = vmul.f32 %v2226_v61, %v3127_v24  ;;  %v3487_v24 = vld [vmem:[#allocation21_spill] sm:$0xff] }
 0x410   : > { %2235 = vrcp.f32 %v1038_v10  ;;  %v2228_v60 = vpop.eup %2227  ;;  %v1659_v10 = vadd.f32 %v1658_v28, %v1635_v27 }
 0x411   : > { %v1576_v8 = vpop.xlane.xlu1 %1575  ;;  %2237 = vrcp.f32 %v1573_v30  ;;  %v1098_v30 = vmul.f32 %v2226_v61, %v3123_v46  ;;  %v1637_v49 = vmul.f32 %v2228_v60, %v3129_v59  ;;  %v1638_v46 = vmul.f32 %v2228_v60, %v3135_v12 }
 0x412   : > { %v2230_v52 = vpop.eup %2229  ;;  %v1141_v45 = vadd.f32 %v1140_v29, %v1099_v37 }
 0x413   : > { %v1041_v13 = vpop.xlane.xlu0 %1040  ;;  %v1100_v33 = vmul.f32 %v2230_v52, %v3139_v20  ;;  %v1101_v0 = vmul.f32 %v2230_v52, %v3143_v22  ;;  %v1120_v34 = vadd.f32 %v1119_v15, %v1098_v30  ;;  %v1680_v20 = vadd.f32 %v1679_v44, %v1636_v36  ;;  %v3490_v22 = vld [vmem:[#allocation22_spill] sm:$0xff]  ;;  %v3502_v44 = vld [vmem:[#allocation32_spill] sm:$0xff] }
 0x414   : > { %2239 = vrcp.f32 %v1041_v13  ;;  %v2232_v7 = vpop.eup %2231 }
 0x415   : > { %2241 = vrcp.f32 %v1576_v8  ;;  %v1579_v43 = vpop.xlane.xlu1 %1578  ;;  %v1639_v3 = vmul.f32 %v2232_v7, %v3487_v24  ;;  %v1660_v8 = vadd.f32 %v1659_v10, %v1637_v49  ;;  %v1640_v62 = vmul.f32 %v2232_v7, %v3490_v22  ;;  %v3500_v7 = vld [vmem:[#allocation36_spill] sm:$0xff]  ;;  %v3504_v10 = vld [vmem:[#allocation38_spill] sm:$0xff] }
 0x416   : > { %2243 = vrcp.f32 %v1579_v43  ;;  %v2234_v14 = vpop.eup %2233  ;;  %v1121_v19 = vadd.f32 %v1120_v34, %v1100_v33  ;;  %v1142_v12 = vadd.f32 %v1141_v45, %v1101_v0  ;;  %v1681_v13 = vadd.f32 %v1680_v20, %v1638_v46  ;;  %v3495_v43 = vld [vmem:[#allocation33_spill] sm:$0xff]  ;;  %v3506_v45 = vld [vmem:[#allocation40_spill] sm:$0xff]  ;;  %v3508_v22 = vld [vmem:[#allocation42_spill] sm:$0xff] }
 0x417   : > { %v1044_v40 = vpop.xlane.xlu0 %1043  ;;  %v1102_v59 = vmul.f32 %v2234_v14, %v3488_v56  ;;  %v1103_v50 = vmul.f32 %v2234_v14, %v3489_v26  ;;  %v1661_v55 = vadd.f32 %v1660_v8, %v1639_v3  ;;  %v3507_v20 = vld [vmem:[#allocation41_spill] sm:$0xff] }
 0x418   : > { %2245 = vrcp.f32 %v1044_v40  ;;  %v1682_v60 = vadd.f32 %v1681_v13, %v1640_v62 }
 0x419   : > { %v1582_v47 = vpop.xlane.xlu1 %1581  ;;  %v1122_v9 = vadd.f32 %v1121_v19, %v1102_v59  ;;  %v1143_v58 = vadd.f32 %v1142_v12, %v1103_v50 }
 0x41a   : > { %2247 = vrcp.f32 %v1582_v47  ;;  %v2236_v54 = vpop.eup %2235  ;;  %v3501_v47 = vld [vmem:[#allocation31_spill] sm:$0xff] }
 0x41b   : > { %v1047_v35 = vpop.xlane.xlu0 %1046  ;;  %v2238_v51 = vpop.eup %2237  ;;  %v1104_v16 = vmul.f32 %v2236_v54, %v3491_v63  ;;  %v1105_v41 = vmul.f32 %v2236_v54, %v3492_v53 }
 0x41c   : > { %2249 = vrcp.f32 %v1047_v35  ;;  %v1641_v39 = vmul.f32 %v2238_v51, %v3493_v1  ;;  %v1642_v48 = vmul.f32 %v2238_v51, %v3494_v6  ;;  %v3503_v35 = vld [vmem:[#allocation37_spill] sm:$0xff]  ;;  %v3505_v51 = vld [vmem:[#allocation39_spill] sm:$0xff]  ;;  %v3510_v6 = vld [vmem:[#allocation44_spill] sm:$0xff] }
 0x41d   : > { %v1585_v4 = vpop.xlane.xlu1 %1584  ;;  %v1123_v52 = vadd.f32 %v1122_v9, %v1104_v16  ;;  %v1144_v18 = vadd.f32 %v1143_v58, %v1105_v41  ;;  %v3509_v1 = vld [vmem:[#allocation43_spill] sm:$0xff] }
 0x41e   : > { %v2240_v38 = vpop.eup %2239  ;;  %2251 = vrcp.f32 %v1585_v4  ;;  %v1662_v30 = vadd.f32 %v1661_v55, %v1641_v39  ;;  %v1683_v37 = vadd.f32 %v1682_v60, %v1642_v48 }
 0x41f   : > { %v2242_v42 = vpop.eup %2241  ;;  %v1106_v61 = vmul.f32 %v2240_v38, %v3495_v43  ;;  %v1107_v57 = vmul.f32 %v2240_v38, %v3496_v23 }
 0x420   : > { %v2244_v25 = vpop.eup %2243  ;;  %v1643_v31 = vmul.f32 %v2242_v42, %v3497_v32  ;;  %v1644_v40 = vmul.f32 %v2242_v42, %v3498_v11 }
 0x421   : > { %v1588_v17 = vpop.xlane.xlu1 %1587  ;;  %v1645_v14 = vmul.f32 %v2244_v25, %v3501_v47  ;;  %v1646_v36 = vmul.f32 %v2244_v25, %v3502_v44  ;;  %v1124_v49 = vadd.f32 %v1123_v52, %v1106_v61  ;;  %v1145_v15 = vadd.f32 %v1144_v18, %v1107_v57  ;;  %v2270_v44 = vld [vmem:[%s2629_s0 + $0x30] sm:$0xff] }
 0x422   : > { %v2246_v21 = vpop.eup %2245  ;;  %2253 = vrcp.f32 %v1588_v17  ;;  %v1663_v33 = vadd.f32 %v1662_v30, %v1643_v31  ;;  %v1684_v0 = vadd.f32 %v1683_v37, %v1644_v40 }
 0x423   : > { %v1108_v27 = vmul.f32 %v2246_v21, %v3499_v5  ;;  %v1109_v2 = vmul.f32 %v2246_v21, %v3500_v7 }
 0x424   : > { %v2248_v28 = vpop.eup %2247  ;;  %v1664_v26 = vadd.f32 %v1663_v33, %v1645_v14  ;;  %v1685_v50 = vadd.f32 %v1684_v0, %v1646_v36  ;;  %v2269_v14 = vld [vmem:[%s2622_s22 + $0x30] sm:$0xff]  ;;  %v3511_v33 = vld [vmem:[#allocation15_spill] sm:$0xff] }
 0x425   : > { %v1647_v54 = vmul.f32 %v2248_v28, %v3503_v35  ;;  %v1648_v46 = vmul.f32 %v2248_v28, %v3504_v10  ;;  %v1125_v24 = vadd.f32 %v1124_v49, %v1108_v27  ;;  %v1146_v3 = vadd.f32 %v1145_v15, %v1109_v2  ;;  %v2271_v49 = vld [vmem:[%s2622_s22 + $0x38] sm:$0xff]  ;;  %v3512_v35 = vld [vmem:[#allocation16_spill] sm:$0xff]  ;;  %v3513_v10 = vld [vmem:[#allocation13_spill] sm:$0xff] }
 0x426   : > { %v2250_v29 = vpop.eup %2249  ;;  %v1731_v36 = vadd.f32 %v2270_v44, %v2269_v14  ;;  %v2272_v15 = vld [vmem:[%s2629_s0 + $0x38] sm:$0xff]  ;;  %v1775_v44 = vld [vmem:[%s3364_s5] sm:$0x1] }
 0x427   : > { %v1110_v34 = vmul.f32 %v2250_v29, %v3505_v51  ;;  %v1111_v56 = vmul.f32 %v2250_v29, %v3506_v45  ;;  %v1665_v42 = vadd.f32 %v1664_v26, %v1647_v54  ;;  %v1686_v19 = vadd.f32 %v1685_v50, %v1648_v46  ;;  %v3515_v51 = vld [vmem:[#allocation17_spill] sm:$0xff]  ;;  %v3516_v45 = vld [vmem:[#allocation18_spill] sm:$0xff]  ;;  %v3518_v50 = vld [vmem:[#allocation20_spill] sm:$0xff] }
 0x428   : > { %v2252_v59 = vpop.eup %2251  ;;  %v1732_v29 = vadd.f32 %v2272_v15, %v2271_v49 }
 0x429   : > { %v1126_v4 = vadd.f32 %v1125_v24, %v1110_v34  ;;  %v1147_v38 = vadd.f32 %v1146_v3, %v1111_v56  ;;  %v1649_v8 = vmul.f32 %v2252_v59, %v3507_v20  ;;  %v1650_v62 = vmul.f32 %v2252_v59, %v3508_v22  ;;  %v3514_v24 = vld [vmem:[#allocation14_spill] sm:$0xff]  ;;  %v3517_v59 = vld [vmem:[#allocation19_spill] sm:$0xff] }
 0x42b   : > { %v1127_v12 = vrot.slane %v1126_v4, 4  ;;  %v1148_v63 = vrot.slane %v1147_v38, 4  ;;  %v1666_v53 = vadd.f32 %v1665_v42, %v1649_v8  ;;  %v1687_v41 = vadd.f32 %v1686_v19, %v1650_v62  ;;  %v1738_v42 = vpop.xlane.xlu1 %1737 }
 0x42c   : > { %v2254_v16 = vpop.eup %2253  ;;  %v1742_v62 = vadd.f32 %v1732_v29, %v1731_v36 }
 0x42d   : > { %v1128_v13 = vadd.f32 %v1127_v12, %v1126_v4  ;;  %v1149_v55 = vadd.f32 %v1148_v63, %v1147_v38  ;;  %v1651_v39 = vmul.f32 %v2254_v16, %v3509_v1  ;;  %v1652_v48 = vmul.f32 %v2254_v16, %v3510_v6  ;;  %v1735_v12 = vpop.xlane.xlu0 %1734 }
 0x42f   : > { %v1129_v25 = vrot.slane %v1128_v13, 2  ;;  %v1150_v9 = vrot.slane %v1149_v55, 2  ;;  %v1667_v58 = vadd.f32 %v1666_v53, %v1651_v39  ;;  %v1688_v43 = vadd.f32 %v1687_v41, %v1652_v48  ;;  %v1741_v19 = vpop.xlane.xlu1 %1740 }
 0x431   : > { %v1668_v61 = vrot.slane %v1667_v58, 4  ;;  %v1689_v23 = vrot.slane %v1688_v43, 4  ;;  %v1130_v57 = vadd.f32 %v1129_v25, %v1128_v13  ;;  %v1151_v17 = vadd.f32 %v1150_v9, %v1149_v55  ;;  %v1754_v13 = vld [vmem:[%s3363_s4 + $0x8] sm:$0xff]  ;;  %v1753_v55 = vld [vmem:[%s3363_s4] sm:$0xff] }
 0x433   : > { %v1669_v21 = vadd.f32 %v1668_v61, %v1667_v58  ;;  %v1690_v60 = vadd.f32 %v1689_v23, %v1688_v43  ;;  %v1131_v52 = vrot.slane %v1130_v57, 1  ;;  %v1152_v18 = vrot.slane %v1151_v17, 1  ;;  %v1755_v58 = vld [vmem:[%s3363_s4 + $0x10] sm:$0xff] }
 0x435   : > { %v1670_v32 = vrot.slane %v1669_v21, 2  ;;  %v1691_v31 = vrot.slane %v1690_v60, 2  ;;  %v1132_v7 = vadd.f32 %v1131_v52, %v1130_v57  ;;  %v1153_v2 = vadd.f32 %v1152_v18, %v1151_v17 }
 0x437   : > { %v1671_v11 = vadd.f32 %v1670_v32, %v1669_v21  ;;  %v1692_v40 = vadd.f32 %v1691_v31, %v1690_v60  ;;  %v1756_v32 = vld [vmem:[%s3363_s4 + $0x18] sm:$0xff] }
 0x439   : > { %v1672_v5 = vrot.slane %v1671_v11, 1  ;;  %v1693_v27 = vrot.slane %v1692_v40, 1 }
 0x43b   : > { %v1673_v28 = vadd.f32 %v1672_v5, %v1671_v11  ;;  %v1694_v30 = vadd.f32 %v1693_v27, %v1692_v40 }
 0x43d   : > { %v1695_v37 = vadd.f32 %v1673_v28, %v1132_v7  ;;  %v1696_v47 = vadd.f32 %v1694_v30, %v1153_v2  ;;  %v1780_v30 = vlaneseq }
 0x43f   : > { %v1707_v0 = vmul.f32 %v3511_v33, %v1695_v37  ;;  %v1708_v54 = vmul.f32 %v3512_v35, %v1696_v47  ;;  %v1705_v46 = vmul.f32 %v3513_v10, %v1695_v37  ;;  %v1706_v3 = vmul.f32 %v3514_v24, %v1696_v47  ;;  %v1779_v33 = vld [vmem:[#allocation6 + $0x8] sm:$0xff] }
 0x440   : > { %v1709_v34 = vmul.f32 %v3515_v51, %v1695_v37  ;;  %v1710_v56 = vmul.f32 %v3516_v45, %v1696_v47  ;;  %v1711_v26 = vmul.f32 %v3517_v59, %v1695_v37  ;;  %v1712_v4 = vmul.f32 %v3518_v50, %v1696_v47  ;;  %v1792_v51 = vld [vmem:[%s3366_s7] sm:$0xff] }
 0x441   : > { %v1716_v38 = vadd.f32 %v1708_v54, %v1707_v0  ;;  %v1713_v20 = vadd.f32 %v1706_v3, %v1705_v46  ;;  %v1781_v14 = vshrl.u32 %v1780_v30, 7  ;;  %v1778_v0 = vld [vmem:[#allocation6] sm:$0xff]  ;;  %v1793_v3 = vld [vmem:[%s3366_s7 + $0x8] sm:$0xff] }
 0x442   : > { %v1719_v8 = vadd.f32 %v1710_v56, %v1709_v34  ;;  %v1722_v22 = vadd.f32 %v1712_v4, %v1711_v26 }
 0x443   : > { %1717 = vadd.xlane.f32.xlu1 %v1716_v38  ;;  %1714 = vadd.xlane.f32.xlu0 %v1713_v20  ;;  %v1782_v15 = vsub.s32 0, %v1781_v14 }
 0x447   : > { %1720 = vadd.xlane.f32.xlu0 %v1719_v8  ;;  %1743 = vadd.xlane.f32.xlu1 %v1742_v62 }
 0x44b   : > { %1723 = vadd.xlane.f32.xlu0 %v1722_v22 }
 0x4d0   : > { %v1718_v63 = vpop.xlane.xlu1 %1717  ;;  %v1715_v16 = vpop.xlane.xlu0 %1714 }
 0x4d1   : > { %v1746_v53 = vadd.f32 %v1738_v42, %v1718_v63  ;;  %v1745_v41 = vadd.f32 %v1735_v12, %v1715_v16 }
 0x4d3   : > { %v1750_v1 = vmul.f32 0.00390625, %v1746_v53  ;;  %v1749_v39 = vmul.f32 0.00390625, %v1745_v41 }
 0x4d4   : > { %v1721_v6 = vpop.xlane.xlu0 %1720  ;;  %v1744_v43 = vpop.xlane.xlu1 %1743 }
 0x4d5   : > { %v1758_v48 = vmul.f32 %v1754_v13, %v1750_v1  ;;  %v1757_v25 = vmul.f32 %v1753_v55, %v1749_v39  ;;  %v1747_v9 = vadd.f32 %v1741_v19, %v1721_v6 }
 0x4d7   : > { %v1751_v61 = vmul.f32 0.00390625, %v1747_v9  ;;  %v1763_v57 = vsel %vm1761_vm1, %v1758_v48, 0.0  ;;  %v1762_v17 = vsel %vm1761_vm1, %v1757_v25, 0.0 }
 0x4d8   : > { %v1724_v23 = vpop.xlane.xlu0 %1723  ;;  %v1764_v40 = vadd.f32 %v1763_v57, %v1762_v17 }
 0x4d9   : > { %v1759_v21 = vmul.f32 %v1755_v58, %v1751_v61  ;;  %v1748_v60 = vadd.f32 %v1744_v43, %v1724_v23 }
 0x4db   : > { %v1765_v31 = vsel %vm1761_vm1, %v1759_v21, 0.0  ;;  %v1752_v11 = vmul.f32 0.00390625, %v1748_v60 }
 0x4dc   : > { %v1766_v18 = vadd.f32 %v1765_v31, %v1764_v40 }
 0x4dd   : > { %v1760_v52 = vmul.f32 %v1756_v32, %v1752_v11 }
 0x4df   : > { %v1767_v5 = vsel %vm1761_vm1, %v1760_v52, 0.0 }
 0x4e0   : > { %v1768_v27 = vadd.f32 %v1767_v5, %v1766_v18 }
 0x4e2   : > { %v1769_v7 = vrot.slane %v1768_v27, 4 }
 0x4e4   : > { %v1770_v2 = vadd.f32 %v1769_v7, %v1768_v27 }
 0x4e6   : > { %v1771_v28 = vrot.slane %v1770_v2, 2 }
 0x4e8   : > { %v1772_v37 = vadd.f32 %v1771_v28, %v1770_v2 }
 0x4ea   : > { %v1773_v47 = vrot.slane %v1772_v37, 1 }
 0x4ec   : > { %v1774_v36 = vadd.f32 %v1773_v47, %v1772_v37 }
 0x4ee   : > { %v1776_v49 = vadd.f32 %v1775_v44, %v1774_v36 }
 0x4f0   : > { %v1777_v29 = vmax.f32 %v1776_v49, 0.0 }
 0x4f2   : > { %v1783_v35 = vrot.slane %v1777_v29, %v1782_v15 }
 0x4f4   : > { %v1785_v54 = vmul.f32 %v1783_v35, %v1779_v33  ;;  %v1784_v10 = vmul.f32 %v1783_v35, %v1778_v0 }
 0x4f6   : > { %v1789_v46 = vsel %vm1761_vm1, %v1785_v54, 0.0  ;;  %v1786_v24 = vsel %vm1761_vm1, %v1784_v10, 0.0 }
 0x4f7   : > { %1790 = vadd.xlane.f32.xlu1 %v1789_v46  ;;  %1787 = vadd.xlane.f32.xlu0 %v1786_v24 }
 0x584   : > { %v1791_v34 = vpop.xlane.xlu1 %1790  ;;  %v1788_v45 = vpop.xlane.xlu0 %1787 }
 0x585   : > { %v1795_v56 = vadd.f32 %v1793_v3, %v1791_v34  ;;  %v1794_v59 = vadd.f32 %v1792_v51, %v1788_v45 }
 0x587   : > { %v1797_v26 = vsub.f32 0.0, %v1795_v56  ;;  %v1796_v50 = vsub.f32 0.0, %v1794_v59 }
 0x589   : > { %v1800_v4 = vmul.f32 1.442695, %v1797_v26  ;;  %v1798_v38 = vmul.f32 1.442695, %v1796_v50 }
 0x58b   : > { %2255 = vpow2.f32 %v1800_v4 }
 0x58c   : > { %2257 = vpow2.f32 %v1798_v38 }
 0x595   : > { %v2256_v20 = vpop.eup %2255 }
 0x596   : > { %v2258_v8 = vpop.eup %2257  ;;  %v1803_v22 = vadd.f32 1.0, %v2256_v20 }
 0x597   : > { %v1802_v62 = vadd.f32 1.0, %v2258_v8 }
 0x598   : > { %2259 = vrcp.f32 %v1803_v22 }
 0x599   : > { %2261 = vrcp.f32 %v1802_v62 }
 0x5a2   : > { %v2260_v42 = vpop.eup %2259 }
 0x5a3   : > { %v2262_v19 = vpop.eup %2261  ;;  %1810 = vst.msk [vmem:[%s379_s14 + $0x8] sm:$0xff] %vm1808_vm2, %v2260_v42 }
 0x5a4   : > { %1809 = vst.msk [vmem:[%s379_s14] sm:$0xff] %vm1808_vm2, %v2262_v19 }
 0x5a5 PF: > { %p21_p9 = scmp.ge.s32.totalorder %s2502_s15, 4   ;;  %s3519_s27 = smov %s2395_s28 }
 0x5a6   : > { %s3520_s28 = smov %s2399_s29  ;;  %s3521_s29 = smov %s2528_s19 }
 0x5a7   : > { %s3522_s30 = smov %s2502_s15  ;;  %23 = sbr.rel (!%p21_p9) target bundleno = 8 (0x8), region = 109 }
 0x5ae   :  { %1832 = vsyncpa [#allocation3], 1 }
 0x5af   :  { %1834 = vsyncpa [#allocation3 + $0x1], 1 }
 0x5b0   :  { %1835 = vsyncpa [#allocation5], 1 }
 0x5b1   :  { %1837 = vsyncpa [#allocation5 + $0x1], 1 }

</bundles_post_ra>
